<compile_context>
chip_gen: v5e
topology: v5e:2x2
jax: 0.10.0
libtpu: 0.0.40
codegen_flags: <defaults>
</compile_context>

<pallas_src>
import jax
import jax.numpy as jnp
import numpy as np
from jax.experimental import pallas as pl
from jax.experimental.pallas import tpu as pltpu


def _round_up(v, m):
    return -(-v // m) * m


def _lstm_kernel(xw_ref, wh_ref, out_ref, h_sc, c_sc):
    """One grid step = one (batch block, time block) tile.

    xw_ref : (Tb, Bb, 4*Hp)  precomputed x@Wx + b for this tile (time-major)
    wh_ref : (Hp, 4*Hp)      packed hidden->gates weights (resident; f32 or bf16)
    out_ref: (Tb, Bb, 2*Hp)  per-step [c | h], lane-dense
    h_sc/c_sc: (Bb, Hp) f32  carried recurrent state (persists across time blocks)

    Correctness of the carry relies on the TIME axis being the LAST grid axis and
    marked "arbitrary" (innermost, sequential), with a reset at time-block 0.
    """
    @pl.when(pl.program_id(1) == 0)          # new batch block -> reset carried state
    def _():
        h_sc[...] = jnp.zeros_like(h_sc)
        c_sc[...] = jnp.zeros_like(c_sc)

    hp = h_sc.shape[-1]
    tb = xw_ref.shape[0]
    wh = wh_ref[...]                          # loaded once per grid step (resident)
    mm_dtype = wh.dtype                       # bf16 on the fast path, f32 otherwise

    def step(j, carry):
        h, c = carry                                          # f32 (Bb, Hp)
        gates = xw_ref[j].astype(jnp.float32) + jnp.dot(      # (Bb, 4Hp), MXU
            h.astype(mm_dtype), wh, preferred_element_type=jnp.float32)
        # 128-lane-aligned static slices -> no XLU shuffles.
        f = jax.nn.sigmoid(gates[:, 0 * hp:1 * hp])
        i = jax.nn.sigmoid(gates[:, 1 * hp:2 * hp])
        o = jax.nn.sigmoid(gates[:, 2 * hp:3 * hp])
        g = gates[:, 3 * hp:4 * hp]
        c = f * c + i * g
        h = (1.0 - o) * h + o * c
        # One wide, unmasked, lane-dense store per step (c and h fused).
        out_ref[j] = jnp.concatenate([c, h], axis=-1)
        return h, c

    h, c = jax.lax.fori_loop(0, tb, step, (h_sc[...], c_sc[...]),
                             unroll=min(tb, 8))
    h_sc[...] = h
    c_sc[...] = c


def lstm_forward(x, params, *, t_block=None, batch_block=None, use_bf16=False):
    """x: (B, T, I) float32. Returns (c_out, h_out), each (B, T, H) float32.

    use_bf16=True streams xw in bf16 and feeds the recurrent MXU matmul bf16 operands
    (gate math / h / c state stay f32).  For real workloads pick batch_block up to
    128 (v5e) / 256 (v6e, v7x) to fill MXU rows, and size t_block/batch_block so
    2*(Bb*Tb*4Hp + Bb*Tb*2Hp)*bytes + Hp*4Hp*bytes stays inside the scoped VMEM
    budget (16 MiB default on v5e, 32 MiB on v6e/v7x; 64 MiB physical on v7x).
    """
    B, T, I = x.shape
    H = params["Wfh"].shape[0]
    Hp = _round_up(H, 128)                    # lane-align every gate to a 128 boundary
    f32 = jnp.float32

    # --- pack 4 gates into lane-aligned chunks: Wx (I,4Hp), Wh (Hp,4Hp), b (4Hp,) ----
    padx = lambda w: jnp.pad(w.astype(f32), ((0, 0), (0, Hp - H)))
    padh = lambda w: jnp.pad(w.astype(f32), ((0, Hp - H), (0, Hp - H)))
    padb = lambda v: jnp.pad(v.astype(f32), (0, Hp - H))
    wx = jnp.concatenate([padx(params["Wfx"]), padx(params["Wix"]),
                          padx(params["Wox"]), padx(params["Wcx"])], axis=1)
    wh = jnp.concatenate([padh(params["Wfh"]), padh(params["Wih"]),
                          padh(params["Woh"]), padh(params["Wch"])], axis=1)
    b = jnp.concatenate([padb(params["bf"]), padb(params["bi"]),
                         padb(params["bo"]), padb(params["bc"])])
    # Padded h/c columns stay exactly 0 through the recurrence (zero weights + zero
    # bias -> g_pad = 0, c_pad = h_pad = 0), so padding never contaminates real lanes.

    # --- hoist the time-parallel input projection out of the recurrence -------------
    if use_bf16:
        xw = jnp.einsum("bti,ik->btk", x.astype(jnp.bfloat16), wx.astype(jnp.bfloat16),
                        preferred_element_type=f32) + b
    else:
        xw = jnp.einsum("bti,ik->btk", x.astype(f32), wx, precision="highest") + b

    # --- pad batch to a sublane multiple and go time-major --------------------------
    Bp = _round_up(B, 8)
    if Bp != B:
        xw = jnp.pad(xw, ((0, Bp - B), (0, 0), (0, 0)))
    xw_t = jnp.transpose(xw, (1, 0, 2))       # (T, Bp, 4Hp)

    stream_dtype = jnp.bfloat16 if use_bf16 else f32
    xw_t = xw_t.astype(stream_dtype)
    wh = wh.astype(stream_dtype)

    tb = t_block if t_block is not None else T
    bb = batch_block if batch_block is not None else Bp
    assert T % tb == 0, "t_block must divide T"
    assert Bp % bb == 0 and bb % 8 == 0, "batch_block must divide padded batch, mult of 8"
    nb, nt = Bp // bb, T // tb

    out = pl.pallas_call(
        _lstm_kernel,
        out_shape=jax.ShapeDtypeStruct((T, Bp, 2 * Hp), f32),
        grid_spec=pltpu.PrefetchScalarGridSpec(
            num_scalar_prefetch=0,
            # Time MUST stay the last ("arbitrary") grid axis: the h/c scratch carry
            # depends on innermost sequential time iteration + reset at time block 0.
            grid=(nb, nt),
            in_specs=[
                pl.BlockSpec((tb, bb, 4 * Hp), lambda bi, ti: (ti, bi, 0)),
                pl.BlockSpec((Hp, 4 * Hp), lambda bi, ti: (0, 0)),   # resident weights
            ],
            out_specs=pl.BlockSpec((tb, bb, 2 * Hp), lambda bi, ti: (ti, bi, 0)),
            scratch_shapes=[pltpu.VMEM((bb, Hp), f32),   # h carry
                            pltpu.VMEM((bb, Hp), f32)],  # c carry
        ),
        compiler_params=pltpu.CompilerParams(
            dimension_semantics=("parallel", "arbitrary")),
    )(xw_t, wh)

    out = jnp.transpose(out, (1, 0, 2))       # (Bp, T, 2Hp)
    c_out = out[:B, :, :H]
    h_out = out[:B, :, Hp:Hp + H]
    return c_out, h_out


def lstm_ref(x, p):
    """Pure-JAX reference mirroring the PyTorch forward (per-gate weights, f32)."""
    B, T, _ = x.shape
    H = p["Wfh"].shape[0]
    hi = "highest"
    h = jnp.zeros((B, H), jnp.float32)
    c = jnp.zeros((B, H), jnp.float32)
    cs, hs = [], []
    for t in range(T):
        xt = x[:, t, :]
        f = jax.nn.sigmoid(jnp.dot(xt, p["Wfx"], precision=hi)
                           + jnp.dot(h, p["Wfh"], precision=hi) + p["bf"])
        i = jax.nn.sigmoid(jnp.dot(xt, p["Wix"], precision=hi)
                           + jnp.dot(h, p["Wih"], precision=hi) + p["bi"])
        o = jax.nn.sigmoid(jnp.dot(xt, p["Wox"], precision=hi)
                           + jnp.dot(h, p["Woh"], precision=hi) + p["bo"])
        g = (jnp.dot(xt, p["Wcx"], precision=hi)
             + jnp.dot(h, p["Wch"], precision=hi) + p["bc"])
        c = f * c + i * g
        h = (1.0 - o) * h + o * c
        cs.append(c)
        hs.append(h)
    return jnp.stack(cs, axis=1), jnp.stack(hs, axis=1)


def init_params(key, input_size, hidden_size, output_size):
    assert hidden_size == output_size, "reference broadcast requires H == output_size"
    ks = jax.random.split(key, 8)

    def rnd(k, shape):
        # randn scaled by 0.5/sqrt(fan_in): keeps this tanh-free recurrence
        # well-conditioned (values stay O(1)) so the finite-precision comparison
        # against the f32 reference is meaningful.  Unscaled randn makes the state
        # grow ~5x per step, amplifying benign MXU rounding without bound.
        return jax.random.normal(k, shape, dtype=jnp.float32) * (0.5 / np.sqrt(shape[0]))

    return {
        "Wfh": rnd(ks[0], (hidden_size, hidden_size)),
        "Wfx": rnd(ks[1], (input_size, hidden_size)),
        "bf": jnp.zeros((hidden_size,), jnp.float32),
        "Wih": rnd(ks[2], (hidden_size, hidden_size)),
        "Wix": rnd(ks[3], (input_size, hidden_size)),
        "bi": jnp.zeros((hidden_size,), jnp.float32),
        "Woh": rnd(ks[4], (hidden_size, hidden_size)),
        "Wox": rnd(ks[5], (input_size, hidden_size)),
        "bo": jnp.zeros((hidden_size,), jnp.float32),
        "Wch": rnd(ks[6], (hidden_size, output_size)),
        "Wcx": rnd(ks[7], (input_size, output_size)),
        "bc": jnp.zeros((output_size,), jnp.float32),
    }


if __name__ == "__main__":
    key = jax.random.PRNGKey(0)
    # batch, seq, input_size, hidden_size (== output_size)
    B, T, I, H = 4, 16, 16, 32

    k_x, k_p = jax.random.split(key)
    x = jax.random.normal(k_x, (B, T, I), dtype=jnp.float32)
    params = init_params(k_p, I, H, H)

    c_ref, h_ref = lstm_ref(x, params)

    # f32 recurrent-matmul path: grid = (1 batch block 'parallel', 2 time blocks
    # 'arbitrary') so the h/c scratch carry across time blocks is exercised.
    c_out, h_out = lstm_forward(x, params, t_block=8, batch_block=8)
    jax.block_until_ready((c_out, h_out))
    np.testing.assert_allclose(np.asarray(c_out), np.asarray(c_ref), rtol=2e-2, atol=2e-2)
    np.testing.assert_allclose(np.asarray(h_out), np.asarray(h_ref), rtol=2e-2, atol=2e-2)

    # bf16-operand MXU / bf16-streaming perf path: smoke-check against the f32
    # reference with a tolerance that absorbs per-step bf16 rounding (values are O(1)).
    c_bf, h_bf = lstm_forward(x, params, t_block=8, batch_block=8, use_bf16=True)
    jax.block_until_ready((c_bf, h_bf))
    np.testing.assert_allclose(np.asarray(c_bf), np.asarray(c_ref), rtol=1e-1, atol=1e-1)
    np.testing.assert_allclose(np.asarray(h_bf), np.asarray(h_ref), rtol=1e-1, atol=1e-1)

    print("KERNEL_OK")
</pallas_src>

<mosaic_0001>
module attributes {stable_mosaic.version = 11 : i64} {
  func.func @_lstm_kernel(%arg0: i32, %arg1: i32, %arg2: memref<8x8x512xf32, #tpu.memory_space<vmem>>, %arg3: memref<128x512xf32, #tpu.memory_space<vmem>>, %arg4: memref<8x8x256xf32, #tpu.memory_space<vmem>>, %arg5: memref<8x128xf32, #tpu.memory_space<vmem>>, %arg6: memref<8x128xf32, #tpu.memory_space<vmem>>) attributes {dimension_semantics = [#tpu.dimension_semantics<parallel>, #tpu.dimension_semantics<arbitrary>], iteration_bounds = array<i64: 1, 2>, scalar_prefetch = 0 : i64, scratch_operands = 2 : i64, tpu.core_type = #tpu.core_type<tc>, window_params = [{transform_indices = @transform_0, window_bounds = array<i64: 8, 8, 512>}, {pipeline_mode = #tpu.pipeline_mode<synchronous>, transform_indices = @transform_1, window_bounds = array<i64: 128, 512>}, {transform_indices = @transform_2, window_bounds = array<i64: 8, 8, 256>}]} {
    %c0_i32 = arith.constant 0 : i32
    %0 = arith.cmpi eq, %arg1, %c0_i32 : i32
    %1 = arith.extui %0 : i1 to i32
    %c0_i32_0 = arith.constant 0 : i32
    %2 = arith.cmpi ne, %1, %c0_i32_0 : i32
    scf.if %2 {
      %cst_82 = arith.constant 0.000000e+00 : f32
      %304 = vector.broadcast %cst_82 : f32 to vector<8x128xf32>
      %c0_83 = arith.constant 0 : index
      %c0_84 = arith.constant 0 : index
      %305 = vector.load %arg5[%c0_83, %c0_84] : memref<8x128xf32, #tpu.memory_space<vmem>>, vector<8x128xf32>
      tpu.vector_store %arg5[%c0_83, %c0_84], %304 {strides = array<i32>} : memref<8x128xf32, #tpu.memory_space<vmem>>, vector<8x128xf32>,
      %cst_85 = arith.constant 0.000000e+00 : f32
      %306 = vector.broadcast %cst_85 : f32 to vector<8x128xf32>
      %c0_86 = arith.constant 0 : index
      %c0_87 = arith.constant 0 : index
      %307 = vector.load %arg6[%c0_86, %c0_87] : memref<8x128xf32, #tpu.memory_space<vmem>>, vector<8x128xf32>
      tpu.vector_store %arg6[%c0_86, %c0_87], %306 {strides = array<i32>} : memref<8x128xf32, #tpu.memory_space<vmem>>, vector<8x128xf32>,
    } else {
    }
    %c0 = arith.constant 0 : index
    %c0_1 = arith.constant 0 : index
    %3 = vector.load %arg3[%c0, %c0_1] : memref<128x512xf32, #tpu.memory_space<vmem>>, vector<128x512xf32>
    %c0_2 = arith.constant 0 : index
    %c0_3 = arith.constant 0 : index
    %4 = vector.load %arg5[%c0_2, %c0_3] : memref<8x128xf32, #tpu.memory_space<vmem>>, vector<8x128xf32>
    %c0_4 = arith.constant 0 : index
    %c0_5 = arith.constant 0 : index
    %5 = vector.load %arg6[%c0_4, %c0_5] : memref<8x128xf32, #tpu.memory_space<vmem>>, vector<8x128xf32>
    %c0_i32_6 = arith.constant 0 : i32
    %6 = arith.index_cast %c0_i32_6 : i32 to index
    %c0_7 = arith.constant 0 : index
    %c0_8 = arith.constant 0 : index
    %7 = vector.load %arg2[%6, %c0_7, %c0_8] : memref<8x8x512xf32, #tpu.memory_space<vmem>>, vector<1x8x512xf32>
    %8 = vector.shape_cast %7 : vector<1x8x512xf32> to vector<8x512xf32>
    %cst = arith.constant dense<0.000000e+00> : vector<8x512xf32>
    %9 = tpu.matmul %4, %3, %cst {dimension_numbers = #tpu.dot_dimension_numbers<[1], [0], [0], [1], [0, 0, 1, 1], [], []>} : vector<8x128xf32>, vector<128x512xf32>, vector<8x512xf32> -> vector<8x512xf32>
    %10 = arith.addf %8, %9 : vector<8x512xf32>
    %11 = vector.extract_strided_slice %10 {offsets = [0, 0], sizes = [8, 128], strides = [1, 1]} : vector<8x512xf32> to vector<8x128xf32>
    %12 = arith.negf %11 : vector<8x128xf32>
    %13 = math.exp %12 : vector<8x128xf32>
    %cst_9 = arith.constant 1.000000e+00 : f32
    %14 = vector.broadcast %cst_9 : f32 to vector<8x128xf32>
    %15 = arith.addf %14, %13 : vector<8x128xf32>
    %16 = arith.divf %14, %15 : vector<8x128xf32>
    %17 = vector.extract_strided_slice %10 {offsets = [0, 128], sizes = [8, 128], strides = [1, 1]} : vector<8x512xf32> to vector<8x128xf32>
    %18 = arith.negf %17 : vector<8x128xf32>
    %19 = math.exp %18 : vector<8x128xf32>
    %cst_10 = arith.constant 1.000000e+00 : f32
    %20 = vector.broadcast %cst_10 : f32 to vector<8x128xf32>
    %21 = arith.addf %20, %19 : vector<8x128xf32>
    %22 = arith.divf %20, %21 : vector<8x128xf32>
    %23 = vector.extract_strided_slice %10 {offsets = [0, 256], sizes = [8, 128], strides = [1, 1]} : vector<8x512xf32> to vector<8x128xf32>
    %24 = arith.negf %23 : vector<8x128xf32>
    %25 = math.exp %24 : vector<8x128xf32>
    %cst_11 = arith.constant 1.000000e+00 : f32
    %26 = vector.broadcast %cst_11 : f32 to vector<8x128xf32>
    %27 = arith.addf %26, %25 : vector<8x128xf32>
    %28 = arith.divf %26, %27 : vector<8x128xf32>
    %29 = vector.extract_strided_slice %10 {offsets = [0, 384], sizes = [8, 128], strides = [1, 1]} : vector<8x512xf32> to vector<8x128xf32>
    %30 = arith.mulf %16, %5 : vector<8x128xf32>
    %31 = arith.mulf %22, %29 : vector<8x128xf32>
    %32 = arith.addf %30, %31 : vector<8x128xf32>
    %cst_12 = arith.constant 1.000000e+00 : f32
    %33 = vector.broadcast %cst_12 : f32 to vector<8x128xf32>
    %34 = arith.subf %33, %28 : vector<8x128xf32>
    %35 = arith.mulf %34, %4 : vector<8x128xf32>
    %36 = arith.mulf %28, %32 : vector<8x128xf32>
    %37 = arith.addf %35, %36 : vector<8x128xf32>
    %38 = tpu.concatenate %32, %37 in 1 : vector<8x128xf32>, vector<8x128xf32> -> vector<8x256xf32>
    %39 = arith.index_cast %c0_i32_6 : i32 to index
    %c0_13 = arith.constant 0 : index
    %c0_14 = arith.constant 0 : index
    %40 = vector.load %arg4[%39, %c0_13, %c0_14] : memref<8x8x256xf32, #tpu.memory_space<vmem>>, vector<1x8x256xf32>
    %41 = vector.shape_cast %40 : vector<1x8x256xf32> to vector<8x256xf32>
    %42 = vector.shape_cast %38 : vector<8x256xf32> to vector<1x8x256xf32>
    tpu.vector_store %arg4[%39, %c0_13, %c0_14], %42 {strides = array<i32>} : memref<8x8x256xf32, #tpu.memory_space<vmem>>, vector<1x8x256xf32>,
    %c1_i32 = arith.constant 1 : i32
    %43 = arith.index_cast %c1_i32 : i32 to index
    %c0_15 = arith.constant 0 : index
    %c0_16 = arith.constant 0 : index
    %44 = vector.load %arg2[%43, %c0_15, %c0_16] : memref<8x8x512xf32, #tpu.memory_space<vmem>>, vector<1x8x512xf32>
    %45 = vector.shape_cast %44 : vector<1x8x512xf32> to vector<8x512xf32>
    %cst_17 = arith.constant dense<0.000000e+00> : vector<8x512xf32>
    %46 = tpu.matmul %37, %3, %cst_17 {dimension_numbers = #tpu.dot_dimension_numbers<[1], [0], [0], [1], [0, 0, 1, 1], [], []>} : vector<8x128xf32>, vector<128x512xf32>, vector<8x512xf32> -> vector<8x512xf32>
    %47 = arith.addf %45, %46 : vector<8x512xf32>
    %48 = vector.extract_strided_slice %47 {offsets = [0, 0], sizes = [8, 128], strides = [1, 1]} : vector<8x512xf32> to vector<8x128xf32>
    %49 = arith.negf %48 : vector<8x128xf32>
    %50 = math.exp %49 : vector<8x128xf32>
    %cst_18 = arith.constant 1.000000e+00 : f32
    %51 = vector.broadcast %cst_18 : f32 to vector<8x128xf32>
    %52 = arith.addf %51, %50 : vector<8x128xf32>
    %53 = arith.divf %51, %52 : vector<8x128xf32>
    %54 = vector.extract_strided_slice %47 {offsets = [0, 128], sizes = [8, 128], strides = [1, 1]} : vector<8x512xf32> to vector<8x128xf32>
    %55 = arith.negf %54 : vector<8x128xf32>
    %56 = math.exp %55 : vector<8x128xf32>
    %cst_19 = arith.constant 1.000000e+00 : f32
    %57 = vector.broadcast %cst_19 : f32 to vector<8x128xf32>
    %58 = arith.addf %57, %56 : vector<8x128xf32>
    %59 = arith.divf %57, %58 : vector<8x128xf32>
    %60 = vector.extract_strided_slice %47 {offsets = [0, 256], sizes = [8, 128], strides = [1, 1]} : vector<8x512xf32> to vector<8x128xf32>
    %61 = arith.negf %60 : vector<8x128xf32>
    %62 = math.exp %61 : vector<8x128xf32>
    %cst_20 = arith.constant 1.000000e+00 : f32
    %63 = vector.broadcast %cst_20 : f32 to vector<8x128xf32>
    %64 = arith.addf %63, %62 : vector<8x128xf32>
    %65 = arith.divf %63, %64 : vector<8x128xf32>
    %66 = vector.extract_strided_slice %47 {offsets = [0, 384], sizes = [8, 128], strides = [1, 1]} : vector<8x512xf32> to vector<8x128xf32>
    %67 = arith.mulf %53, %32 : vector<8x128xf32>
    %68 = arith.mulf %59, %66 : vector<8x128xf32>
    %69 = arith.addf %67, %68 : vector<8x128xf32>
    %cst_21 = arith.constant 1.000000e+00 : f32
    %70 = vector.broadcast %cst_21 : f32 to vector<8x128xf32>
    %71 = arith.subf %70, %65 : vector<8x128xf32>
    %72 = arith.mulf %71, %37 : vector<8x128xf32>
    %73 = arith.mulf %65, %69 : vector<8x128xf32>
    %74 = arith.addf %72, %73 : vector<8x128xf32>
    %75 = tpu.concatenate %69, %74 in 1 : vector<8x128xf32>, vector<8x128xf32> -> vector<8x256xf32>
    %76 = arith.index_cast %c1_i32 : i32 to index
    %c0_22 = arith.constant 0 : index
    %c0_23 = arith.constant 0 : index
    %77 = vector.load %arg4[%76, %c0_22, %c0_23] : memref<8x8x256xf32, #tpu.memory_space<vmem>>, vector<1x8x256xf32>
    %78 = vector.shape_cast %77 : vector<1x8x256xf32> to vector<8x256xf32>
    %79 = vector.shape_cast %75 : vector<8x256xf32> to vector<1x8x256xf32>
    tpu.vector_store %arg4[%76, %c0_22, %c0_23], %79 {strides = array<i32>} : memref<8x8x256xf32, #tpu.memory_space<vmem>>, vector<1x8x256xf32>,
    %c2_i32 = arith.constant 2 : i32
    %80 = arith.index_cast %c2_i32 : i32 to index
    %c0_24 = arith.constant 0 : index
    %c0_25 = arith.constant 0 : index
    %81 = vector.load %arg2[%80, %c0_24, %c0_25] : memref<8x8x512xf32, #tpu.memory_space<vmem>>, vector<1x8x512xf32>
    %82 = vector.shape_cast %81 : vector<1x8x512xf32> to vector<8x512xf32>
    %cst_26 = arith.constant dense<0.000000e+00> : vector<8x512xf32>
    %83 = tpu.matmul %74, %3, %cst_26 {dimension_numbers = #tpu.dot_dimension_numbers<[1], [0], [0], [1], [0, 0, 1, 1], [], []>} : vector<8x128xf32>, vector<128x512xf32>, vector<8x512xf32> -> vector<8x512xf32>
    %84 = arith.addf %82, %83 : vector<8x512xf32>
    %85 = vector.extract_strided_slice %84 {offsets = [0, 0], sizes = [8, 128], strides = [1, 1]} : vector<8x512xf32> to vector<8x128xf32>
    %86 = arith.negf %85 : vector<8x128xf32>
    %87 = math.exp %86 : vector<8x128xf32>
    %cst_27 = arith.constant 1.000000e+00 : f32
    %88 = vector.broadcast %cst_27 : f32 to vector<8x128xf32>
    %89 = arith.addf %88, %87 : vector<8x128xf32>
    %90 = arith.divf %88, %89 : vector<8x128xf32>
    %91 = vector.extract_strided_slice %84 {offsets = [0, 128], sizes = [8, 128], strides = [1, 1]} : vector<8x512xf32> to vector<8x128xf32>
    %92 = arith.negf %91 : vector<8x128xf32>
    %93 = math.exp %92 : vector<8x128xf32>
    %cst_28 = arith.constant 1.000000e+00 : f32
    %94 = vector.broadcast %cst_28 : f32 to vector<8x128xf32>
    %95 = arith.addf %94, %93 : vector<8x128xf32>
    %96 = arith.divf %94, %95 : vector<8x128xf32>
    %97 = vector.extract_strided_slice %84 {offsets = [0, 256], sizes = [8, 128], strides = [1, 1]} : vector<8x512xf32> to vector<8x128xf32>
    %98 = arith.negf %97 : vector<8x128xf32>
    %99 = math.exp %98 : vector<8x128xf32>
    %cst_29 = arith.constant 1.000000e+00 : f32
    %100 = vector.broadcast %cst_29 : f32 to vector<8x128xf32>
    %101 = arith.addf %100, %99 : vector<8x128xf32>
    %102 = arith.divf %100, %101 : vector<8x128xf32>
    %103 = vector.extract_strided_slice %84 {offsets = [0, 384], sizes = [8, 128], strides = [1, 1]} : vector<8x512xf32> to vector<8x128xf32>
    %104 = arith.mulf %90, %69 : vector<8x128xf32>
    %105 = arith.mulf %96, %103 : vector<8x128xf32>
    %106 = arith.addf %104, %105 : vector<8x128xf32>
    %cst_30 = arith.constant 1.000000e+00 : f32
    %107 = vector.broadcast %cst_30 : f32 to vector<8x128xf32>
    %108 = arith.subf %107, %102 : vector<8x128xf32>
    %109 = arith.mulf %108, %74 : vector<8x128xf32>
    %110 = arith.mulf %102, %106 : vector<8x128xf32>
    %111 = arith.addf %109, %110 : vector<8x128xf32>
    %112 = tpu.concatenate %106, %111 in 1 : vector<8x128xf32>, vector<8x128xf32> -> vector<8x256xf32>
    %113 = arith.index_cast %c2_i32 : i32 to index
    %c0_31 = arith.constant 0 : index
    %c0_32 = arith.constant 0 : index
    %114 = vector.load %arg4[%113, %c0_31, %c0_32] : memref<8x8x256xf32, #tpu.memory_space<vmem>>, vector<1x8x256xf32>
    %115 = vector.shape_cast %114 : vector<1x8x256xf32> to vector<8x256xf32>
    %116 = vector.shape_cast %112 : vector<8x256xf32> to vector<1x8x256xf32>
    tpu.vector_store %arg4[%113, %c0_31, %c0_32], %116 {strides = array<i32>} : memref<8x8x256xf32, #tpu.memory_space<vmem>>, vector<1x8x256xf32>,
    %c3_i32 = arith.constant 3 : i32
    %117 = arith.index_cast %c3_i32 : i32 to index
    %c0_33 = arith.constant 0 : index
    %c0_34 = arith.constant 0 : index
    %118 = vector.load %arg2[%117, %c0_33, %c0_34] : memref<8x8x512xf32, #tpu.memory_space<vmem>>, vector<1x8x512xf32>
    %119 = vector.shape_cast %118 : vector<1x8x512xf32> to vector<8x512xf32>
    %cst_35 = arith.constant dense<0.000000e+00> : vector<8x512xf32>
    %120 = tpu.matmul %111, %3, %cst_35 {dimension_numbers = #tpu.dot_dimension_numbers<[1], [0], [0], [1], [0, 0, 1, 1], [], []>} : vector<8x128xf32>, vector<128x512xf32>, vector<8x512xf32> -> vector<8x512xf32>
    %121 = arith.addf %119, %120 : vector<8x512xf32>
    %122 = vector.extract_strided_slice %121 {offsets = [0, 0], sizes = [8, 128], strides = [1, 1]} : vector<8x512xf32> to vector<8x128xf32>
    %123 = arith.negf %122 : vector<8x128xf32>
    %124 = math.exp %123 : vector<8x128xf32>
    %cst_36 = arith.constant 1.000000e+00 : f32
    %125 = vector.broadcast %cst_36 : f32 to vector<8x128xf32>
    %126 = arith.addf %125, %124 : vector<8x128xf32>
    %127 = arith.divf %125, %126 : vector<8x128xf32>
    %128 = vector.extract_strided_slice %121 {offsets = [0, 128], sizes = [8, 128], strides = [1, 1]} : vector<8x512xf32> to vector<8x128xf32>
    %129 = arith.negf %128 : vector<8x128xf32>
    %130 = math.exp %129 : vector<8x128xf32>
    %cst_37 = arith.constant 1.000000e+00 : f32
    %131 = vector.broadcast %cst_37 : f32 to vector<8x128xf32>
    %132 = arith.addf %131, %130 : vector<8x128xf32>
    %133 = arith.divf %131, %132 : vector<8x128xf32>
    %134 = vector.extract_strided_slice %121 {offsets = [0, 256], sizes = [8, 128], strides = [1, 1]} : vector<8x512xf32> to vector<8x128xf32>
    %135 = arith.negf %134 : vector<8x128xf32>
    %136 = math.exp %135 : vector<8x128xf32>
    %cst_38 = arith.constant 1.000000e+00 : f32
    %137 = vector.broadcast %cst_38 : f32 to vector<8x128xf32>
    %138 = arith.addf %137, %136 : vector<8x128xf32>
    %139 = arith.divf %137, %138 : vector<8x128xf32>
    %140 = vector.extract_strided_slice %121 {offsets = [0, 384], sizes = [8, 128], strides = [1, 1]} : vector<8x512xf32> to vector<8x128xf32>
    %141 = arith.mulf %127, %106 : vector<8x128xf32>
    %142 = arith.mulf %133, %140 : vector<8x128xf32>
    %143 = arith.addf %141, %142 : vector<8x128xf32>
    %cst_39 = arith.constant 1.000000e+00 : f32
    %144 = vector.broadcast %cst_39 : f32 to vector<8x128xf32>
    %145 = arith.subf %144, %139 : vector<8x128xf32>
    %146 = arith.mulf %145, %111 : vector<8x128xf32>
    %147 = arith.mulf %139, %143 : vector<8x128xf32>
    %148 = arith.addf %146, %147 : vector<8x128xf32>
    %149 = tpu.concatenate %143, %148 in 1 : vector<8x128xf32>, vector<8x128xf32> -> vector<8x256xf32>
    %150 = arith.index_cast %c3_i32 : i32 to index
    %c0_40 = arith.constant 0 : index
    %c0_41 = arith.constant 0 : index
    %151 = vector.load %arg4[%150, %c0_40, %c0_41] : memref<8x8x256xf32, #tpu.memory_space<vmem>>, vector<1x8x256xf32>
    %152 = vector.shape_cast %151 : vector<1x8x256xf32> to vector<8x256xf32>
    %153 = vector.shape_cast %149 : vector<8x256xf32> to vector<1x8x256xf32>
    tpu.vector_store %arg4[%150, %c0_40, %c0_41], %153 {strides = array<i32>} : memref<8x8x256xf32, #tpu.memory_space<vmem>>, vector<1x8x256xf32>,
    %c4_i32 = arith.constant 4 : i32
    %154 = arith.index_cast %c4_i32 : i32 to index
    %c0_42 = arith.constant 0 : index
    %c0_43 = arith.constant 0 : index
    %155 = vector.load %arg2[%154, %c0_42, %c0_43] : memref<8x8x512xf32, #tpu.memory_space<vmem>>, vector<1x8x512xf32>
    %156 = vector.shape_cast %155 : vector<1x8x512xf32> to vector<8x512xf32>
    %cst_44 = arith.constant dense<0.000000e+00> : vector<8x512xf32>
    %157 = tpu.matmul %148, %3, %cst_44 {dimension_numbers = #tpu.dot_dimension_numbers<[1], [0], [0], [1], [0, 0, 1, 1], [], []>} : vector<8x128xf32>, vector<128x512xf32>, vector<8x512xf32> -> vector<8x512xf32>
    %158 = arith.addf %156, %157 : vector<8x512xf32>
    %159 = vector.extract_strided_slice %158 {offsets = [0, 0], sizes = [8, 128], strides = [1, 1]} : vector<8x512xf32> to vector<8x128xf32>
    %160 = arith.negf %159 : vector<8x128xf32>
    %161 = math.exp %160 : vector<8x128xf32>
    %cst_45 = arith.constant 1.000000e+00 : f32
    %162 = vector.broadcast %cst_45 : f32 to vector<8x128xf32>
    %163 = arith.addf %162, %161 : vector<8x128xf32>
    %164 = arith.divf %162, %163 : vector<8x128xf32>
    %165 = vector.extract_strided_slice %158 {offsets = [0, 128], sizes = [8, 128], strides = [1, 1]} : vector<8x512xf32> to vector<8x128xf32>
    %166 = arith.negf %165 : vector<8x128xf32>
    %167 = math.exp %166 : vector<8x128xf32>
    %cst_46 = arith.constant 1.000000e+00 : f32
    %168 = vector.broadcast %cst_46 : f32 to vector<8x128xf32>
    %169 = arith.addf %168, %167 : vector<8x128xf32>
    %170 = arith.divf %168, %169 : vector<8x128xf32>
    %171 = vector.extract_strided_slice %158 {offsets = [0, 256], sizes = [8, 128], strides = [1, 1]} : vector<8x512xf32> to vector<8x128xf32>
    %172 = arith.negf %171 : vector<8x128xf32>
    %173 = math.exp %172 : vector<8x128xf32>
    %cst_47 = arith.constant 1.000000e+00 : f32
    %174 = vector.broadcast %cst_47 : f32 to vector<8x128xf32>
    %175 = arith.addf %174, %173 : vector<8x128xf32>
    %176 = arith.divf %174, %175 : vector<8x128xf32>
    %177 = vector.extract_strided_slice %158 {offsets = [0, 384], sizes = [8, 128], strides = [1, 1]} : vector<8x512xf32> to vector<8x128xf32>
    %178 = arith.mulf %164, %143 : vector<8x128xf32>
    %179 = arith.mulf %170, %177 : vector<8x128xf32>
    %180 = arith.addf %178, %179 : vector<8x128xf32>
    %cst_48 = arith.constant 1.000000e+00 : f32
    %181 = vector.broadcast %cst_48 : f32 to vector<8x128xf32>
    %182 = arith.subf %181, %176 : vector<8x128xf32>
    %183 = arith.mulf %182, %148 : vector<8x128xf32>
    %184 = arith.mulf %176, %180 : vector<8x128xf32>
    %185 = arith.addf %183, %184 : vector<8x128xf32>
    %186 = tpu.concatenate %180, %185 in 1 : vector<8x128xf32>, vector<8x128xf32> -> vector<8x256xf32>
    %187 = arith.index_cast %c4_i32 : i32 to index
    %c0_49 = arith.constant 0 : index
    %c0_50 = arith.constant 0 : index
    %188 = vector.load %arg4[%187, %c0_49, %c0_50] : memref<8x8x256xf32, #tpu.memory_space<vmem>>, vector<1x8x256xf32>
    %189 = vector.shape_cast %188 : vector<1x8x256xf32> to vector<8x256xf32>
    %190 = vector.shape_cast %186 : vector<8x256xf32> to vector<1x8x256xf32>
    tpu.vector_store %arg4[%187, %c0_49, %c0_50], %190 {strides = array<i32>} : memref<8x8x256xf32, #tpu.memory_space<vmem>>, vector<1x8x256xf32>,
    %c5_i32 = arith.constant 5 : i32
    %191 = arith.index_cast %c5_i32 : i32 to index
    %c0_51 = arith.constant 0 : index
    %c0_52 = arith.constant 0 : index
    %192 = vector.load %arg2[%191, %c0_51, %c0_52] : memref<8x8x512xf32, #tpu.memory_space<vmem>>, vector<1x8x512xf32>
    %193 = vector.shape_cast %192 : vector<1x8x512xf32> to vector<8x512xf32>
    %cst_53 = arith.constant dense<0.000000e+00> : vector<8x512xf32>
    %194 = tpu.matmul %185, %3, %cst_53 {dimension_numbers = #tpu.dot_dimension_numbers<[1], [0], [0], [1], [0, 0, 1, 1], [], []>} : vector<8x128xf32>, vector<128x512xf32>, vector<8x512xf32> -> vector<8x512xf32>
    %195 = arith.addf %193, %194 : vector<8x512xf32>
    %196 = vector.extract_strided_slice %195 {offsets = [0, 0], sizes = [8, 128], strides = [1, 1]} : vector<8x512xf32> to vector<8x128xf32>
    %197 = arith.negf %196 : vector<8x128xf32>
    %198 = math.exp %197 : vector<8x128xf32>
    %cst_54 = arith.constant 1.000000e+00 : f32
    %199 = vector.broadcast %cst_54 : f32 to vector<8x128xf32>
    %200 = arith.addf %199, %198 : vector<8x128xf32>
    %201 = arith.divf %199, %200 : vector<8x128xf32>
    %202 = vector.extract_strided_slice %195 {offsets = [0, 128], sizes = [8, 128], strides = [1, 1]} : vector<8x512xf32> to vector<8x128xf32>
    %203 = arith.negf %202 : vector<8x128xf32>
    %204 = math.exp %203 : vector<8x128xf32>
    %cst_55 = arith.constant 1.000000e+00 : f32
    %205 = vector.broadcast %cst_55 : f32 to vector<8x128xf32>
    %206 = arith.addf %205, %204 : vector<8x128xf32>
    %207 = arith.divf %205, %206 : vector<8x128xf32>
    %208 = vector.extract_strided_slice %195 {offsets = [0, 256], sizes = [8, 128], strides = [1, 1]} : vector<8x512xf32> to vector<8x128xf32>
    %209 = arith.negf %208 : vector<8x128xf32>
    %210 = math.exp %209 : vector<8x128xf32>
    %cst_56 = arith.constant 1.000000e+00 : f32
    %211 = vector.broadcast %cst_56 : f32 to vector<8x128xf32>
    %212 = arith.addf %211, %210 : vector<8x128xf32>
    %213 = arith.divf %211, %212 : vector<8x128xf32>
    %214 = vector.extract_strided_slice %195 {offsets = [0, 384], sizes = [8, 128], strides = [1, 1]} : vector<8x512xf32> to vector<8x128xf32>
    %215 = arith.mulf %201, %180 : vector<8x128xf32>
    %216 = arith.mulf %207, %214 : vector<8x128xf32>
    %217 = arith.addf %215, %216 : vector<8x128xf32>
    %cst_57 = arith.constant 1.000000e+00 : f32
    %218 = vector.broadcast %cst_57 : f32 to vector<8x128xf32>
    %219 = arith.subf %218, %213 : vector<8x128xf32>
    %220 = arith.mulf %219, %185 : vector<8x128xf32>
    %221 = arith.mulf %213, %217 : vector<8x128xf32>
    %222 = arith.addf %220, %221 : vector<8x128xf32>
    %223 = tpu.concatenate %217, %222 in 1 : vector<8x128xf32>, vector<8x128xf32> -> vector<8x256xf32>
    %224 = arith.index_cast %c5_i32 : i32 to index
    %c0_58 = arith.constant 0 : index
    %c0_59 = arith.constant 0 : index
    %225 = vector.load %arg4[%224, %c0_58, %c0_59] : memref<8x8x256xf32, #tpu.memory_space<vmem>>, vector<1x8x256xf32>
    %226 = vector.shape_cast %225 : vector<1x8x256xf32> to vector<8x256xf32>
    %227 = vector.shape_cast %223 : vector<8x256xf32> to vector<1x8x256xf32>
    tpu.vector_store %arg4[%224, %c0_58, %c0_59], %227 {strides = array<i32>} : memref<8x8x256xf32, #tpu.memory_space<vmem>>, vector<1x8x256xf32>,
    %c6_i32 = arith.constant 6 : i32
    %228 = arith.index_cast %c6_i32 : i32 to index
    %c0_60 = arith.constant 0 : index
    %c0_61 = arith.constant 0 : index
    %229 = vector.load %arg2[%228, %c0_60, %c0_61] : memref<8x8x512xf32, #tpu.memory_space<vmem>>, vector<1x8x512xf32>
    %230 = vector.shape_cast %229 : vector<1x8x512xf32> to vector<8x512xf32>
    %cst_62 = arith.constant dense<0.000000e+00> : vector<8x512xf32>
    %231 = tpu.matmul %222, %3, %cst_62 {dimension_numbers = #tpu.dot_dimension_numbers<[1], [0], [0], [1], [0, 0, 1, 1], [], []>} : vector<8x128xf32>, vector<128x512xf32>, vector<8x512xf32> -> vector<8x512xf32>
    %232 = arith.addf %230, %231 : vector<8x512xf32>
    %233 = vector.extract_strided_slice %232 {offsets = [0, 0], sizes = [8, 128], strides = [1, 1]} : vector<8x512xf32> to vector<8x128xf32>
    %234 = arith.negf %233 : vector<8x128xf32>
    %235 = math.exp %234 : vector<8x128xf32>
    %cst_63 = arith.constant 1.000000e+00 : f32
    %236 = vector.broadcast %cst_63 : f32 to vector<8x128xf32>
    %237 = arith.addf %236, %235 : vector<8x128xf32>
    %238 = arith.divf %236, %237 : vector<8x128xf32>
    %239 = vector.extract_strided_slice %232 {offsets = [0, 128], sizes = [8, 128], strides = [1, 1]} : vector<8x512xf32> to vector<8x128xf32>
    %240 = arith.negf %239 : vector<8x128xf32>
    %241 = math.exp %240 : vector<8x128xf32>
    %cst_64 = arith.constant 1.000000e+00 : f32
    %242 = vector.broadcast %cst_64 : f32 to vector<8x128xf32>
    %243 = arith.addf %242, %241 : vector<8x128xf32>
    %244 = arith.divf %242, %243 : vector<8x128xf32>
    %245 = vector.extract_strided_slice %232 {offsets = [0, 256], sizes = [8, 128], strides = [1, 1]} : vector<8x512xf32> to vector<8x128xf32>
    %246 = arith.negf %245 : vector<8x128xf32>
    %247 = math.exp %246 : vector<8x128xf32>
    %cst_65 = arith.constant 1.000000e+00 : f32
    %248 = vector.broadcast %cst_65 : f32 to vector<8x128xf32>
    %249 = arith.addf %248, %247 : vector<8x128xf32>
    %250 = arith.divf %248, %249 : vector<8x128xf32>
    %251 = vector.extract_strided_slice %232 {offsets = [0, 384], sizes = [8, 128], strides = [1, 1]} : vector<8x512xf32> to vector<8x128xf32>
    %252 = arith.mulf %238, %217 : vector<8x128xf32>
    %253 = arith.mulf %244, %251 : vector<8x128xf32>
    %254 = arith.addf %252, %253 : vector<8x128xf32>
    %cst_66 = arith.constant 1.000000e+00 : f32
    %255 = vector.broadcast %cst_66 : f32 to vector<8x128xf32>
    %256 = arith.subf %255, %250 : vector<8x128xf32>
    %257 = arith.mulf %256, %222 : vector<8x128xf32>
    %258 = arith.mulf %250, %254 : vector<8x128xf32>
    %259 = arith.addf %257, %258 : vector<8x128xf32>
    %260 = tpu.concatenate %254, %259 in 1 : vector<8x128xf32>, vector<8x128xf32> -> vector<8x256xf32>
    %261 = arith.index_cast %c6_i32 : i32 to index
    %c0_67 = arith.constant 0 : index
    %c0_68 = arith.constant 0 : index
    %262 = vector.load %arg4[%261, %c0_67, %c0_68] : memref<8x8x256xf32, #tpu.memory_space<vmem>>, vector<1x8x256xf32>
    %263 = vector.shape_cast %262 : vector<1x8x256xf32> to vector<8x256xf32>
    %264 = vector.shape_cast %260 : vector<8x256xf32> to vector<1x8x256xf32>
    tpu.vector_store %arg4[%261, %c0_67, %c0_68], %264 {strides = array<i32>} : memref<8x8x256xf32, #tpu.memory_space<vmem>>, vector<1x8x256xf32>,
    %c7_i32 = arith.constant 7 : i32
    %265 = arith.index_cast %c7_i32 : i32 to index
    %c0_69 = arith.constant 0 : index
    %c0_70 = arith.constant 0 : index
    %266 = vector.load %arg2[%265, %c0_69, %c0_70] : memref<8x8x512xf32, #tpu.memory_space<vmem>>, vector<1x8x512xf32>
    %267 = vector.shape_cast %266 : vector<1x8x512xf32> to vector<8x512xf32>
    %cst_71 = arith.constant dense<0.000000e+00> : vector<8x512xf32>
    %268 = tpu.matmul %259, %3, %cst_71 {dimension_numbers = #tpu.dot_dimension_numbers<[1], [0], [0], [1], [0, 0, 1, 1], [], []>} : vector<8x128xf32>, vector<128x512xf32>, vector<8x512xf32> -> vector<8x512xf32>
    %269 = arith.addf %267, %268 : vector<8x512xf32>
    %270 = vector.extract_strided_slice %269 {offsets = [0, 0], sizes = [8, 128], strides = [1, 1]} : vector<8x512xf32> to vector<8x128xf32>
    %271 = arith.negf %270 : vector<8x128xf32>
    %272 = math.exp %271 : vector<8x128xf32>
    %cst_72 = arith.constant 1.000000e+00 : f32
    %273 = vector.broadcast %cst_72 : f32 to vector<8x128xf32>
    %274 = arith.addf %273, %272 : vector<8x128xf32>
    %275 = arith.divf %273, %274 : vector<8x128xf32>
    %276 = vector.extract_strided_slice %269 {offsets = [0, 128], sizes = [8, 128], strides = [1, 1]} : vector<8x512xf32> to vector<8x128xf32>
    %277 = arith.negf %276 : vector<8x128xf32>
    %278 = math.exp %277 : vector<8x128xf32>
    %cst_73 = arith.constant 1.000000e+00 : f32
    %279 = vector.broadcast %cst_73 : f32 to vector<8x128xf32>
    %280 = arith.addf %279, %278 : vector<8x128xf32>
    %281 = arith.divf %279, %280 : vector<8x128xf32>
    %282 = vector.extract_strided_slice %269 {offsets = [0, 256], sizes = [8, 128], strides = [1, 1]} : vector<8x512xf32> to vector<8x128xf32>
    %283 = arith.negf %282 : vector<8x128xf32>
    %284 = math.exp %283 : vector<8x128xf32>
    %cst_74 = arith.constant 1.000000e+00 : f32
    %285 = vector.broadcast %cst_74 : f32 to vector<8x128xf32>
    %286 = arith.addf %285, %284 : vector<8x128xf32>
    %287 = arith.divf %285, %286 : vector<8x128xf32>
    %288 = vector.extract_strided_slice %269 {offsets = [0, 384], sizes = [8, 128], strides = [1, 1]} : vector<8x512xf32> to vector<8x128xf32>
    %289 = arith.mulf %275, %254 : vector<8x128xf32>
    %290 = arith.mulf %281, %288 : vector<8x128xf32>
    %291 = arith.addf %289, %290 : vector<8x128xf32>
    %cst_75 = arith.constant 1.000000e+00 : f32
    %292 = vector.broadcast %cst_75 : f32 to vector<8x128xf32>
    %293 = arith.subf %292, %287 : vector<8x128xf32>
    %294 = arith.mulf %293, %259 : vector<8x128xf32>
    %295 = arith.mulf %287, %291 : vector<8x128xf32>
    %296 = arith.addf %294, %295 : vector<8x128xf32>
    %297 = tpu.concatenate %291, %296 in 1 : vector<8x128xf32>, vector<8x128xf32> -> vector<8x256xf32>
    %298 = arith.index_cast %c7_i32 : i32 to index
    %c0_76 = arith.constant 0 : index
    %c0_77 = arith.constant 0 : index
    %299 = vector.load %arg4[%298, %c0_76, %c0_77] : memref<8x8x256xf32, #tpu.memory_space<vmem>>, vector<1x8x256xf32>
    %300 = vector.shape_cast %299 : vector<1x8x256xf32> to vector<8x256xf32>
    %301 = vector.shape_cast %297 : vector<8x256xf32> to vector<1x8x256xf32>
    tpu.vector_store %arg4[%298, %c0_76, %c0_77], %301 {strides = array<i32>} : memref<8x8x256xf32, #tpu.memory_space<vmem>>, vector<1x8x256xf32>,
    %c8_i32 = arith.constant 8 : i32
    %c0_78 = arith.constant 0 : index
    %c0_79 = arith.constant 0 : index
    %302 = vector.load %arg5[%c0_78, %c0_79] : memref<8x128xf32, #tpu.memory_space<vmem>>, vector<8x128xf32>
    tpu.vector_store %arg5[%c0_78, %c0_79], %296 {strides = array<i32>} : memref<8x128xf32, #tpu.memory_space<vmem>>, vector<8x128xf32>,
    %c0_80 = arith.constant 0 : index
    %c0_81 = arith.constant 0 : index
    %303 = vector.load %arg6[%c0_80, %c0_81] : memref<8x128xf32, #tpu.memory_space<vmem>>, vector<8x128xf32>
    tpu.vector_store %arg6[%c0_80, %c0_81], %291 {strides = array<i32>} : memref<8x128xf32, #tpu.memory_space<vmem>>, vector<8x128xf32>,
    return
  }
  func.func @transform_0(%arg0: i32, %arg1: i32) -> (i32, i32, i32) {
    %c0_i32 = arith.constant 0 : i32
    %c0_i32_0 = arith.constant 0 : i32
    return %arg1, %arg0, %c0_i32 : i32, i32, i32
  }
  func.func @transform_1(%arg0: i32, %arg1: i32) -> (i32, i32) {
    %c0_i32 = arith.constant 0 : i32
    %c0_i32_0 = arith.constant 0 : i32
    %c0_i32_1 = arith.constant 0 : i32
    return %c0_i32, %c0_i32_0 : i32, i32
  }
  func.func @transform_2(%arg0: i32, %arg1: i32) -> (i32, i32, i32) {
    %c0_i32 = arith.constant 0 : i32
    %c0_i32_0 = arith.constant 0 : i32
    return %arg1, %arg0, %c0_i32 : i32, i32, i32
  }
}

</mosaic_0001>

<bundles_post_ra>
// kernel: tpu_custom_call.1
= control target key start
LH: loop header
LB: loop body
LE: loop exit
PB: predicated region body
PF: predicated region fallthrough
CT: control target
= control target key end

     0   :  { %7 = vsyncpa [#allocation5], 0  ;;  %s3211_s0 = inlined_call_operand.hbm [shape: f32[16,8,512], index: 0, kind: input, shape index: {}]   ;;  %s3212_s1 = inlined_call_operand.hbm [shape: f32[128,512], index: 1, kind: input, shape index: {}]   ;;  %s3213_s2 = inlined_call_operand.hbm [shape: f32[16,8,256], index: 2, kind: output, shape index: {}]  }
   0x1   :  { %9 = vsyncpa [#allocation5 + $0x1], 0 }
   0x2   :  { %10 = vsyncpa [#allocation8], 0 }
   0x3   :  { %11 = vsyncpa [#allocation6], 0 }
   0x4   :  { %13 = vsyncpa [#allocation6 + $0x1], 0  ;;  %s2135_s9 = smov 0   ;;  %s2137_s10 = smov 0  }
   0x5   :  { %s2139_s11 = smov 0   ;;  %s2141_s12 = smov 0  }
   0x6   :  { %s2143_s13 = smov 0   ;;  %s2145_s14 = smov 0  }
   0x7 LB: > { %s1638_s15 = sadd.s32 4294967295, %s2112_s14   ;;  %s1639_s16 = sadd.s32 4294967294, %s2112_s14   ;;  %s2112_s14 = sphi %s2145_s14, %s19_s14   ;;  %s2108_s13 = sphi %s2143_s13, %s3510_s13   ;;  %s2104_s12 = sphi %s2141_s12, %s3509_s12   ;;  %s2100_s11 = sphi %s2139_s11, %s3508_s11   ;;  %s2096_s10 = sphi %s2137_s10, %s3507_s10   ;;  %s2092_s9 = sphi %s2135_s9, %s3506_s9  }
   0x8   : > { %p53_p0 = scmp.ne.s32.totalorder %s2096_s10, %s2092_s9  ;;  %p2169_p1 = scmp.eq.s32.totalorder %s1638_s15, 0 }
   0x9   : > { %p2173_p2 = scmp.eq.s32.totalorder %s1638_s15, 1  ;;  %p106_p3 = scmp.eq.s32.totalorder %s1639_s16, 1 }
   0xa   : > { %p2179_p4 = por %p2169_p1, %p53_p0  ;;  %p1640_p5 = scmp.ge.s32.totalorder %s2112_s14, 1 }
   0xb   : > { %p2184_p6 = por %p106_p3, %p53_p0  ;;  %p113_p7 = scmp.lt.s32.totalorder %s2112_s14, 3 }
   0xc   : > { %s124_s23 = sshll.u32 %s3212_s1, 4  ;;  %s2114_s25 = smov [#allocation7]   ;;  %s125_s23 = int_to_ptr.hbm [resolvable:$true] %s124_s23 }
   0xd   : > { %p2192_p8 = pnand %p1640_p5, %p113_p7  ;;  %s126_s26 = sshll.u32 %s2114_s25, 4  ;;  %s127_s26 = int_to_ptr.vmem [resolvable:$true] %s126_s26 }
   0xe   : > { %p1642_p11 = scmp.ge.s32.totalorder %s2112_s14, 2  ;;  %s2115_s27 = smov 512  }
   0xf   : > { %p1736_p9 = pneg %p2192_p8  ;;  %s2116_s28 = smov 32  }
  0x10   : > { %s28_s29 = sadd.s32 1, %s2108_s13  ;;  %s40_s30 = sadd.s32 1, %s2100_s11 }
  0x11   : > { %p1737_p10 = pnand %p1736_p9, %p2169_p1  ;;  %p29_p12 = scmp.ge.s32.totalorder %s28_s29, 2 }
  0x12   : > { %p47_p13 = scmp.ne.s32.totalorder %s2100_s11, %s2096_s10  ;;  %p48_p0 = scmp.eq.s32.totalorder %s2112_s14, 0 }
  0x13   : > { %1739 = dma.hbm_to_vmem [thread:$0]  (!%p1737_p10), %s125_s23, 8192, %s127_s26, [#allocation8], %s2115_s27, %s2115_s27, %s2116_s28  }
  0x14   : > { %s3512_s29 = smov (%p29_p12, %s28_s29), 0  ;;  %p2211_p3 = por %p48_p0, %p47_p13 }
  0x15   : > { %p2217_p5 = por %p2173_p2, %p47_p13  ;;  %s35_s5 = ssub.s32 %s2108_s13, %s3512_s29 }
  0x16   : > { %p1749_p7 = scmp.lt.s32.totalorder %s2112_s14, 2  ;;  %p38_p9 = scmp.eq.s32.totalorder %s35_s5, 0 }
  0x17   : > { %s140_s6 = sand.u32 1, %s2100_s11   ;;  %s1725_s15 = sshll.u32 %s2108_s13, 8 }
  0x18   : > { %s1643_s7 = sshll.u32 %s140_s6, 8  ;;  %s152_s22 = scalar_lea.hbm %s3211_s0, %s1725_s15 }
  0x19   : > { %s2226_s8 = scalar_select %p38_p9, %s2100_s11, %s40_s30  }
  0x1a   : > { %s144_s23 = scalar_lea.vmem [#allocation4], %s1643_s7  ;;  %s153_s18 = sshll.u32 %s152_s22, 4  ;;  %s154_s18 = int_to_ptr.hbm [resolvable:$true] %s153_s18 }
  0x1b   : > { %s155_s25 = sshll.u32 %s144_s23, 4  ;;  %p1741_p2 = pnand %p1749_p7, %p2211_p3  ;;  %s156_s25 = int_to_ptr.vmem [resolvable:$true] %s155_s25 }
  0x1c   : > { %s141_s26 = scalar_lea.sflag [#allocation5], %s140_s6  ;;  %167 = sbr.rel (%p2192_p8) target bundleno = 1438 (0x59e), region = 28 }
  0x1d   : > { %1743 = dma.hbm_to_vmem [thread:$0]  (!%p1741_p2), %s154_s18, 4096, %s156_s25, %s141_s26, %s2115_s27, %s2115_s27, %s2116_s28  }
  0x21   : > { %s2240_s30 = sand.u32 1, %s2096_s10  }
  0x22   : > { %s1648_s5 = sshll.u32 %s2240_s30, 8  ;;  %s170_s7 = scalar_lea.sflag [#allocation5], %s2240_s30 }
  0x23   : > { %s2244_s15 = scalar_lea.vmem [#allocation4], %s1648_s5 }
  0x24   : > { %2079 = dma.done.wait (%p2179_p4), %s170_s7, 4096  }
  0x25   : > { %2081 = vsyncadd (%p2179_p4), %s170_s7, 4294963200 }
  0x26   : > { %2083 = dma.done.wait (%p2169_p1), [#allocation8], 8192  }
  0x27   : > { %2085 = vsyncadd (%p2169_p1), [#allocation8], 4294959104  ;;  %s1650_s24 = sshll.u32 %s2240_s30, 7  ;;  %p1651_p8 = scmp.ne.s32.totalorder %s2104_s12, 0 }
  0x28   : > { %s2255_s27 = scalar_lea.vmem [#allocation9], %s1650_s24 }
  0x29   : > { %205 = sbr.rel (%p1651_p8) target bundleno = 49 (0x31), region = 40 }
  0x2e   : > { %v2117_v0 = vmov 0.0  }
  0x2f   : > { %206 = vst [vmem:[#allocation2] sm:$0xff] %v2117_v0 }
  0x30   : > { %207 = vst [vmem:[#allocation3] sm:$0xff] %v2117_v0 }
  0x31 PF: > { %v2258_v1 = vld [vmem:[#allocation7 + $0x1e0] sm:$0xff]  ;;  %v2260_v2 = vld [vmem:[#allocation7 + $0x1e8] sm:$0xff]  ;;  %v2262_v3 = vld [vmem:[#allocation7 + $0x1f0] sm:$0xff]  ;;  %s1727_s17 = sshll.u32 %s2104_s12, 7  ;;  %s1538_s6 = sshll.u32 %s2255_s27, 4  ;;  %s1539_s6 = int_to_ptr.vmem [resolvable:$true] %s1538_s6 }
  0x32   : > { %278 = vmatpush.msra.mxu0 %v2258_v1  ;;  %298 = vmatpush.msra.mxu1 %v2260_v2  ;;  %v2266_v4 = vld [vmem:[#allocation7 + $0x1c0] sm:$0xff]  ;;  %v2268_v5 = vld [vmem:[#allocation7 + $0x1c8] sm:$0xff]  ;;  %v2270_v6 = vld [vmem:[#allocation7 + $0x1d0] sm:$0xff]  ;;  %s1537_s3 = scalar_lea.hbm %s3213_s2, %s1727_s17  ;;  %s1523_s16 = scalar_lea.sflag [#allocation6], %s2240_s30 }
  0x33   : > { %318 = vmatpush.msra.mxu2 %v2262_v3  ;;  %v2273_v7 = vld [vmem:[#allocation7 + $0x1a0] sm:$0xff]  ;;  %v2275_v8 = vld [vmem:[#allocation7 + $0x1a8] sm:$0xff]  ;;  %v2279_v9 = vld [vmem:[#allocation7 + $0x1b0] sm:$0xff]  ;;  %s1540_s12 = sshll.u32 %s1537_s3, 4  ;;  %s2046_s18 = scalar_lea.hbm %s3213_s2, 256  ;;  %s1541_s12 = int_to_ptr.hbm [resolvable:$true] %s1540_s12 }
  0x34   : > { %3335 = vst [vmem:[#allocation13_spill] sm:$0xff] %v2273_v7  ;;  %279 = vmatpush.msra.mxu0 %v2266_v4  ;;  %299 = vmatpush.msra.mxu1 %v2268_v5  ;;  %v2282_v10 = vld [vmem:[#allocation7 + $0x180] sm:$0xff]  ;;  %v2284_v11 = vld [vmem:[#allocation7 + $0x188] sm:$0xff]  ;;  %v2288_v12 = vld [vmem:[#allocation7 + $0x190] sm:$0xff]  ;;  %s2040_s21 = sshra.s32 %s1541_s12, 4  ;;  %s2041_s21 = int_to_ptr.hbm [resolvable:$true] %s2040_s21 }
  0x35   : > { %319 = vmatpush.msra.mxu2 %v2270_v6  ;;  %v2291_v13 = vld [vmem:[#allocation7 + $0x160] sm:$0xff]  ;;  %v2293_v14 = vld [vmem:[#allocation7 + $0x168] sm:$0xff]  ;;  %v2297_v15 = vld [vmem:[#allocation7 + $0x170] sm:$0xff]  ;;  %s2042_s22 = scalar_lea.hbm %s2041_s21, 128  ;;  %p2047_p12 = scmp.lt.s32.totalorder %s2041_s21, %s3213_s2 }
  0x36   : > { %280 = vmatpush.msra.mxu0 %v2273_v7  ;;  %300 = vmatpush.msra.mxu1 %v2275_v8  ;;  %v2300_v16 = vld [vmem:[#allocation7 + $0x140] sm:$0xff]  ;;  %v2302_v17 = vld [vmem:[#allocation7 + $0x148] sm:$0xff]  ;;  %v2306_v18 = vld [vmem:[#allocation7 + $0x150] sm:$0xff]  ;;  %p2043_p1 = scmp.ne.s32.totalorder %s2041_s21, %s2042_s22  ;;  %p2048_p13 = scmp.lt.s32.totalorder %s2046_s18, %s2042_s22 }
  0x37   : > { %320 = vmatpush.msra.mxu2 %v2279_v9  ;;  %v2309_v19 = vld [vmem:[#allocation7 + $0x120] sm:$0xff]  ;;  %v2311_v20 = vld [vmem:[#allocation7 + $0x128] sm:$0xff]  ;;  %v2315_v21 = vld [vmem:[#allocation7 + $0x130] sm:$0xff] }
  0x38   : > { %281 = vmatpush.msra.mxu0 %v2282_v10  ;;  %301 = vmatpush.msra.mxu1 %v2284_v11  ;;  %v2318_v22 = vld [vmem:[#allocation7 + $0x100] sm:$0xff]  ;;  %v2320_v23 = vld [vmem:[#allocation7 + $0x108] sm:$0xff]  ;;  %v2322_v24 = vld [vmem:[#allocation7 + $0x1f8] sm:$0xff]  ;;  %p2044_p4 = pnand %p2043_p1, %p2217_p5  ;;  %p2049_p0 = por %p2048_p13, %p2047_p12 }
  0x39   : > { %321 = vmatpush.msra.mxu2 %v2288_v12  ;;  %v2326_v25 = vld [vmem:[#allocation7 + $0x110] sm:$0xff]  ;;  %v2328_v26 = vld [vmem:[#allocation7 + $0x1d8] sm:$0xff]  ;;  %v2331_v27 = vld [vmem:[#allocation7 + $0xe0] sm:$0xff]  ;;  %338 = vmatpush.msra.mxu3 %v2322_v24 }
  0x3a   : > { %282 = vmatpush.msra.mxu0 %v2291_v13  ;;  %302 = vmatpush.msra.mxu1 %v2293_v14  ;;  %v2333_v28 = vld [vmem:[#allocation7 + $0xe8] sm:$0xff]  ;;  %v2338_v29 = vld [vmem:[#allocation7 + $0xf0] sm:$0xff]  ;;  %v2340_v30 = vld [vmem:[#allocation7 + $0x1b8] sm:$0xff]  ;;  %p2045_p10 = pneg %p2044_p4 }
  0x3b   : > { %322 = vmatpush.msra.mxu2 %v2297_v15  ;;  %v2343_v31 = vld [vmem:[#allocation7 + $0xc0] sm:$0xff]  ;;  %v2345_v32 = vld [vmem:[#allocation7 + $0xc8] sm:$0xff]  ;;  %339 = vmatpush.msra.mxu3 %v2328_v26  ;;  %v2350_v33 = vld [vmem:[#allocation7 + $0xd0] sm:$0xff] }
  0x3c   : > { %283 = vmatpush.msra.mxu0 %v2300_v16  ;;  %303 = vmatpush.msra.mxu1 %v2302_v17  ;;  %3336 = vst [vmem:[#allocation14_spill] sm:$0xff] %v2343_v31  ;;  %v2352_v34 = vld [vmem:[#allocation7 + $0x198] sm:$0xff]  ;;  %v2355_v35 = vld [vmem:[#allocation7 + $0xa0] sm:$0xff]  ;;  %v2357_v36 = vld [vmem:[#allocation7 + $0xa8] sm:$0xff]  ;;  %p2050_p3 = pnand %p2049_p0, %p2045_p10 }
  0x3d   : > { %323 = vmatpush.msra.mxu2 %v2306_v18  ;;  %3337 = vst [vmem:[#allocation15_spill] sm:$0xff] %v2345_v32  ;;  %340 = vmatpush.msra.mxu3 %v2340_v30  ;;  %v2362_v37 = vld [vmem:[#allocation7 + $0xb0] sm:$0xff]  ;;  %v2364_v38 = vld [vmem:[#allocation7 + $0x178] sm:$0xff]  ;;  %v2367_v39 = vld [vmem:[#allocation7 + $0x80] sm:$0xff] }
  0x3e   : > { %284 = vmatpush.msra.mxu0 %v2309_v19  ;;  %304 = vmatpush.msra.mxu1 %v2311_v20  ;;  %3338 = vst [vmem:[#allocation16_spill] sm:$0xff] %v2350_v33  ;;  %v2369_v40 = vld [vmem:[#allocation7 + $0x88] sm:$0xff]  ;;  %v2374_v41 = vld [vmem:[#allocation7 + $0x90] sm:$0xff]  ;;  %v2376_v42 = vld [vmem:[#allocation7 + $0x158] sm:$0xff] }
  0x3f   : > { %324 = vmatpush.msra.mxu2 %v2315_v21  ;;  %3339 = vst [vmem:[#allocation17_spill] sm:$0xff] %v2355_v35  ;;  %341 = vmatpush.msra.mxu3 %v2352_v34  ;;  %v2379_v43 = vld [vmem:[#allocation7 + $0x60] sm:$0xff]  ;;  %v2381_v44 = vld [vmem:[#allocation7 + $0x68] sm:$0xff]  ;;  %v2386_v45 = vld [vmem:[#allocation7 + $0x70] sm:$0xff] }
  0x40   : > { %285 = vmatpush.msra.mxu0 %v2318_v22  ;;  %305 = vmatpush.msra.mxu1 %v2320_v23  ;;  %3340 = vst [vmem:[#allocation18_spill] sm:$0xff] %v2357_v36  ;;  %v2388_v46 = vld [vmem:[#allocation7 + $0x138] sm:$0xff]  ;;  %v2391_v47 = vld [vmem:[#allocation7 + $0x40] sm:$0xff]  ;;  %v2393_v48 = vld [vmem:[#allocation7 + $0x48] sm:$0xff] }
  0x41   : > { %325 = vmatpush.msra.mxu2 %v2326_v25  ;;  %3341 = vst [vmem:[#allocation19_spill] sm:$0xff] %v2362_v37  ;;  %342 = vmatpush.msra.mxu3 %v2364_v38  ;;  %v2398_v49 = vld [vmem:[#allocation7 + $0x50] sm:$0xff]  ;;  %v2400_v50 = vld [vmem:[#allocation7 + $0x118] sm:$0xff]  ;;  %v2403_v51 = vld [vmem:[#allocation7 + $0x20] sm:$0xff] }
  0x42   : > { %286 = vmatpush.msra.mxu0 %v2331_v27  ;;  %306 = vmatpush.msra.mxu1 %v2333_v28  ;;  %3342 = vst [vmem:[#allocation20_spill] sm:$0xff] %v2367_v39  ;;  %v2405_v52 = vld [vmem:[#allocation7 + $0x28] sm:$0xff]  ;;  %v2410_v53 = vld [vmem:[#allocation7 + $0x30] sm:$0xff]  ;;  %v2412_v54 = vld [vmem:[#allocation7 + $0xf8] sm:$0xff] }
  0x43   : > { %326 = vmatpush.msra.mxu2 %v2338_v29  ;;  %3343 = vst [vmem:[#allocation21_spill] sm:$0xff] %v2369_v40  ;;  %343 = vmatpush.msra.mxu3 %v2376_v42  ;;  %v2415_v55 = vld [vmem:[#allocation7] sm:$0xff]  ;;  %v2417_v56 = vld [vmem:[#allocation7 + $0x8] sm:$0xff]  ;;  %v2422_v57 = vld [vmem:[#allocation7 + $0x10] sm:$0xff] }
  0x44   : > { %287 = vmatpush.msra.mxu0 %v2343_v31  ;;  %307 = vmatpush.msra.mxu1 %v2345_v32  ;;  %3344 = vst [vmem:[#allocation22_spill] sm:$0xff] %v2374_v41  ;;  %v2424_v58 = vld [vmem:[#allocation2] sm:$0xff]  ;;  %v2430_v59 = vld [vmem:[#allocation7 + $0xd8] sm:$0xff] }
  0x45   : > { %327 = vmatpush.msra.mxu2 %v2350_v33  ;;  %3345 = vst [vmem:[#allocation23_spill] sm:$0xff] %v2379_v43  ;;  %344 = vmatpush.msra.mxu3 %v2388_v46  ;;  %v2436_v60 = vld [vmem:[#allocation7 + $0xb8] sm:$0xff] }
  0x46   : > { %288 = vmatpush.msra.mxu0 %v2355_v35  ;;  %308 = vmatpush.msra.mxu1 %v2357_v36  ;;  %3346 = vst [vmem:[#allocation24_spill] sm:$0xff] %v2381_v44  ;;  %v2440_v61 = vld [vmem:[#allocation7 + $0x98] sm:$0xff] }
  0x47   : > { %328 = vmatpush.msra.mxu2 %v2362_v37  ;;  %3347 = vst [vmem:[#allocation25_spill] sm:$0xff] %v2386_v45  ;;  %345 = vmatpush.msra.mxu3 %v2400_v50  ;;  %v2446_v62 = vld [vmem:[#allocation7 + $0x78] sm:$0xff] }
  0x48   : > { %289 = vmatpush.msra.mxu0 %v2367_v39  ;;  %309 = vmatpush.msra.mxu1 %v2369_v40  ;;  %3348 = vst [vmem:[#allocation26_spill] sm:$0xff] %v2391_v47  ;;  %v2452_v63 = vld [vmem:[#allocation7 + $0x58] sm:$0xff] }
  0x49   : > { %329 = vmatpush.msra.mxu2 %v2374_v41  ;;  %3349 = vst [vmem:[#allocation27_spill] sm:$0xff] %v2393_v48  ;;  %346 = vmatpush.msra.mxu3 %v2412_v54  ;;  %v2458_v0 = vld [vmem:[#allocation7 + $0x38] sm:$0xff] }
  0x4a   : > { %290 = vmatpush.msra.mxu0 %v2379_v43  ;;  %310 = vmatpush.msra.mxu1 %v2381_v44  ;;  %3350 = vst [vmem:[#allocation28_spill] sm:$0xff] %v2398_v49 }
  0x4b   : > { %330 = vmatpush.msra.mxu2 %v2386_v45  ;;  %3351 = vst [vmem:[#allocation29_spill] sm:$0xff] %v2403_v51  ;;  %347 = vmatpush.msra.mxu3 %v2430_v59 }
  0x4c   : > { %3352 = vst [vmem:[#allocation30_spill] sm:$0xff] %v2405_v52  ;;  %291 = vmatpush.msra.mxu0 %v2391_v47  ;;  %311 = vmatpush.msra.mxu1 %v2393_v48 }
  0x4d   : > { %3353 = vst [vmem:[#allocation31_spill] sm:$0xff] %v2410_v53  ;;  %331 = vmatpush.msra.mxu2 %v2398_v49  ;;  %348 = vmatpush.msra.mxu3 %v2436_v60 }
  0x4e   : > { %3354 = vst [vmem:[#allocation32_spill] sm:$0xff] %v2415_v55  ;;  %292 = vmatpush.msra.mxu0 %v2403_v51  ;;  %312 = vmatpush.msra.mxu1 %v2405_v52 }
  0x4f   : > { %3355 = vst [vmem:[#allocation33_spill] sm:$0xff] %v2417_v56  ;;  %332 = vmatpush.msra.mxu2 %v2410_v53  ;;  %349 = vmatpush.msra.mxu3 %v2440_v61 }
  0x50   : > { %3356 = vst [vmem:[#allocation34_spill] sm:$0xff] %v2422_v57  ;;  %293 = vmatpush.msra.mxu0 %v2415_v55  ;;  %313 = vmatpush.msra.mxu1 %v2417_v56 }
  0x51   : > { %3357 = vst [vmem:[#allocation35_spill] sm:$0xff] %v2424_v58  ;;  %333 = vmatpush.msra.mxu2 %v2422_v57  ;;  %294 = vmatmul.f32.vlgmr.msra.gmra.mxu0 %v2424_v58 }
  0x52   : > { %3358 = vst [vmem:[#allocation36_spill] sm:$0xff] %v2430_v59  ;;  %314 = vmatmul.f32.vlgmr.msra.gmra.mxu1 %v2424_v58  ;;  %334 = vmatmul.f32.vlgmr.msra.gmra.mxu2 %v2424_v58 }
  0x53   : > { %3359 = vst [vmem:[#allocation37_spill] sm:$0xff] %v2436_v60  ;;  %433 = vmatpush.msrb.mxu0 %v2258_v1  ;;  %453 = vmatpush.msrb.mxu1 %v2260_v2 }
  0x54   : > { %3360 = vst [vmem:[#allocation38_spill] sm:$0xff] %v2440_v61  ;;  %473 = vmatpush.msrb.mxu2 %v2262_v3  ;;  %350 = vmatpush.msra.mxu3 %v2446_v62 }
  0x55   : > { %434 = vmatpush.msrb.mxu0 %v2266_v4  ;;  %3361 = vst [vmem:[#allocation39_spill] sm:$0xff] %v2446_v62  ;;  %454 = vmatpush.msrb.mxu1 %v2268_v5 }
  0x56   : > { %474 = vmatpush.msrb.mxu2 %v2270_v6  ;;  %3362 = vst [vmem:[#allocation40_spill] sm:$0xff] %v2452_v63  ;;  %351 = vmatpush.msra.mxu3 %v2452_v63 }
  0x57   : > { %435 = vmatpush.msrb.mxu0 %v2273_v7  ;;  %455 = vmatpush.msrb.mxu1 %v2275_v8  ;;  %3363 = vst [vmem:[#allocation41_spill] sm:$0xff] %v2458_v0  ;;  %v2464_v7 = vld [vmem:[#allocation7 + $0x18] sm:$0xff] }
  0x58   : > { %475 = vmatpush.msrb.mxu2 %v2279_v9  ;;  %3364 = vst [vmem:[#allocation42_spill] sm:$0xff] %v2464_v7  ;;  %352 = vmatpush.msra.mxu3 %v2458_v0 }
  0x59   : > { %436 = vmatpush.msrb.mxu0 %v2282_v10  ;;  %456 = vmatpush.msrb.mxu1 %v2284_v11 }
  0x5a   : > { %476 = vmatpush.msrb.mxu2 %v2288_v12  ;;  %353 = vmatpush.msra.mxu3 %v2464_v7 }
  0x5b   : > { %437 = vmatpush.msrb.mxu0 %v2291_v13  ;;  %457 = vmatpush.msrb.mxu1 %v2293_v14 }
  0x5c   : > { %477 = vmatpush.msrb.mxu2 %v2297_v15  ;;  %354 = vmatmul.f32.vlgmr.msra.gmra.mxu3 %v2424_v58  ;;  %v3365_v58 = vld [vmem:[#allocation13_spill] sm:$0xff] }
  0x5d   : > { %438 = vmatpush.msrb.mxu0 %v2300_v16  ;;  %458 = vmatpush.msrb.mxu1 %v2302_v17 }
  0x5e   : > { %478 = vmatpush.msrb.mxu2 %v2306_v18  ;;  %493 = vmatpush.msrb.mxu3 %v2322_v24 }
  0x5f   : > { %439 = vmatpush.msrb.mxu0 %v2309_v19  ;;  %459 = vmatpush.msrb.mxu1 %v2311_v20 }
  0x60   : > { %479 = vmatpush.msrb.mxu2 %v2315_v21  ;;  %494 = vmatpush.msrb.mxu3 %v2328_v26 }
  0x61   : > { %440 = vmatpush.msrb.mxu0 %v2318_v22  ;;  %460 = vmatpush.msrb.mxu1 %v2320_v23 }
  0x62   : > { %480 = vmatpush.msrb.mxu2 %v2326_v25  ;;  %495 = vmatpush.msrb.mxu3 %v2340_v30 }
  0x63   : > { %441 = vmatpush.msrb.mxu0 %v2331_v27  ;;  %461 = vmatpush.msrb.mxu1 %v2333_v28 }
  0x64   : > { %481 = vmatpush.msrb.mxu2 %v2338_v29  ;;  %496 = vmatpush.msrb.mxu3 %v2352_v34 }
  0x65   : > { %442 = vmatpush.msrb.mxu0 %v2343_v31  ;;  %462 = vmatpush.msrb.mxu1 %v2345_v32 }
  0x66   : > { %482 = vmatpush.msrb.mxu2 %v2350_v33  ;;  %497 = vmatpush.msrb.mxu3 %v2364_v38 }
  0x67   : > { %443 = vmatpush.msrb.mxu0 %v2355_v35  ;;  %463 = vmatpush.msrb.mxu1 %v2357_v36 }
  0x68   : > { %483 = vmatpush.msrb.mxu2 %v2362_v37  ;;  %498 = vmatpush.msrb.mxu3 %v2376_v42 }
  0x69   : > { %444 = vmatpush.msrb.mxu0 %v2367_v39  ;;  %464 = vmatpush.msrb.mxu1 %v2369_v40 }
  0x6a   : > { %484 = vmatpush.msrb.mxu2 %v2374_v41  ;;  %499 = vmatpush.msrb.mxu3 %v2388_v46 }
  0x6b   : > { %445 = vmatpush.msrb.mxu0 %v2379_v43  ;;  %465 = vmatpush.msrb.mxu1 %v2381_v44 }
  0x6c   : > { %485 = vmatpush.msrb.mxu2 %v2386_v45  ;;  %500 = vmatpush.msrb.mxu3 %v2400_v50 }
  0x6d   : > { %446 = vmatpush.msrb.mxu0 %v2391_v47  ;;  %466 = vmatpush.msrb.mxu1 %v2393_v48 }
  0x6e   : > { %486 = vmatpush.msrb.mxu2 %v2398_v49  ;;  %501 = vmatpush.msrb.mxu3 %v2412_v54 }
  0x6f   : > { %447 = vmatpush.msrb.mxu0 %v2403_v51  ;;  %467 = vmatpush.msrb.mxu1 %v2405_v52 }
  0x70   : > { %487 = vmatpush.msrb.mxu2 %v2410_v53  ;;  %502 = vmatpush.msrb.mxu3 %v2430_v59 }
  0x71   : > { %448 = vmatpush.msrb.mxu0 %v2415_v55  ;;  %468 = vmatpush.msrb.mxu1 %v2417_v56 }
  0x72   : > { %488 = vmatpush.msrb.mxu2 %v2422_v57  ;;  %503 = vmatpush.msrb.mxu3 %v2436_v60 }
  0x73   : > { %589 = vmatpush.msra.mxu0 %v2258_v1  ;;  %609 = vmatpush.msra.mxu1 %v2260_v2 }
  0x74   : > { %629 = vmatpush.msra.mxu2 %v2262_v3  ;;  %504 = vmatpush.msrb.mxu3 %v2440_v61 }
  0x75   : > { %590 = vmatpush.msra.mxu0 %v2266_v4  ;;  %610 = vmatpush.msra.mxu1 %v2268_v5 }
  0x76   : > { %630 = vmatpush.msra.mxu2 %v2270_v6  ;;  %505 = vmatpush.msrb.mxu3 %v2446_v62 }
  0x77   : > { %591 = vmatpush.msra.mxu0 %v3365_v58  ;;  %611 = vmatpush.msra.mxu1 %v2275_v8 }
  0x78   : > { %631 = vmatpush.msra.mxu2 %v2279_v9  ;;  %506 = vmatpush.msrb.mxu3 %v2452_v63 }
  0x79   : > { %592 = vmatpush.msra.mxu0 %v2282_v10  ;;  %612 = vmatpush.msra.mxu1 %v2284_v11 }
  0x7a   : > { %632 = vmatpush.msra.mxu2 %v2288_v12  ;;  %507 = vmatpush.msrb.mxu3 %v2458_v0 }
  0x7b   : > { %593 = vmatpush.msra.mxu0 %v2291_v13  ;;  %613 = vmatpush.msra.mxu1 %v2293_v14 }
  0x7c   : > { %633 = vmatpush.msra.mxu2 %v2297_v15  ;;  %508 = vmatpush.msrb.mxu3 %v2464_v7 }
  0x7d   : > { %594 = vmatpush.msra.mxu0 %v2300_v16  ;;  %614 = vmatpush.msra.mxu1 %v2302_v17 }
  0x7e   : > { %634 = vmatpush.msra.mxu2 %v2306_v18  ;;  %649 = vmatpush.msra.mxu3 %v2322_v24 }
  0x7f   : > { %595 = vmatpush.msra.mxu0 %v2309_v19  ;;  %615 = vmatpush.msra.mxu1 %v2311_v20 }
  0x80   : > { %635 = vmatpush.msra.mxu2 %v2315_v21  ;;  %650 = vmatpush.msra.mxu3 %v2328_v26 }
  0x81   : > { %596 = vmatpush.msra.mxu0 %v2318_v22  ;;  %616 = vmatpush.msra.mxu1 %v2320_v23 }
  0x82   : > { %636 = vmatpush.msra.mxu2 %v2326_v25  ;;  %651 = vmatpush.msra.mxu3 %v2340_v30 }
  0x83   : > { %597 = vmatpush.msra.mxu0 %v2331_v27  ;;  %617 = vmatpush.msra.mxu1 %v2333_v28 }
  0x84   : > { %637 = vmatpush.msra.mxu2 %v2338_v29  ;;  %652 = vmatpush.msra.mxu3 %v2352_v34 }
  0x85   : > { %598 = vmatpush.msra.mxu0 %v2343_v31  ;;  %618 = vmatpush.msra.mxu1 %v2345_v32 }
  0x86   : > { %638 = vmatpush.msra.mxu2 %v2350_v33  ;;  %653 = vmatpush.msra.mxu3 %v2364_v38 }
  0x87   : > { %599 = vmatpush.msra.mxu0 %v2355_v35  ;;  %619 = vmatpush.msra.mxu1 %v2357_v36 }
  0x88   : > { %639 = vmatpush.msra.mxu2 %v2362_v37  ;;  %654 = vmatpush.msra.mxu3 %v2376_v42 }
  0x89   : > { %600 = vmatpush.msra.mxu0 %v2367_v39  ;;  %620 = vmatpush.msra.mxu1 %v2369_v40 }
  0x8a   : > { %640 = vmatpush.msra.mxu2 %v2374_v41  ;;  %655 = vmatpush.msra.mxu3 %v2388_v46 }
  0x8b   : > { %601 = vmatpush.msra.mxu0 %v2379_v43  ;;  %621 = vmatpush.msra.mxu1 %v2381_v44 }
  0x8c   : > { %641 = vmatpush.msra.mxu2 %v2386_v45  ;;  %656 = vmatpush.msra.mxu3 %v2400_v50 }
  0x8d   : > { %602 = vmatpush.msra.mxu0 %v2391_v47  ;;  %622 = vmatpush.msra.mxu1 %v2393_v48  ;;  %v276_v47 = vld [vmem:[%s2244_s15 + $0x10] sm:$0xff] }
  0x8e   : > { %642 = vmatpush.msra.mxu2 %v2398_v49  ;;  %657 = vmatpush.msra.mxu3 %v2412_v54 }
  0x8f   : > { %603 = vmatpush.msra.mxu0 %v2403_v51  ;;  %623 = vmatpush.msra.mxu1 %v2405_v52  ;;  %v275_v52 = vld [vmem:[%s2244_s15 + $0x8] sm:$0xff] }
  0x90   : > { %643 = vmatpush.msra.mxu2 %v2410_v53  ;;  %658 = vmatpush.msra.mxu3 %v2430_v59  ;;  %v274_v53 = vld [vmem:[%s2244_s15] sm:$0xff] }
  0x91   : > { %604 = vmatpush.msra.mxu0 %v2415_v55  ;;  %624 = vmatpush.msra.mxu1 %v2417_v56 }
  0x92   : > { %644 = vmatpush.msra.mxu2 %v2422_v57  ;;  %659 = vmatpush.msra.mxu3 %v2436_v60  ;;  %v273_v60 = vld [vmem:[#allocation3] sm:$0xff] }
  0x94   : > { %660 = vmatpush.msra.mxu3 %v2440_v61 }
  0x96   : > { %661 = vmatpush.msra.mxu3 %v2446_v62 }
  0x98   : > { %662 = vmatpush.msra.mxu3 %v2452_v63 }
  0x9a   : > { %663 = vmatpush.msra.mxu3 %v2458_v0 }
  0x9c   : > { %664 = vmatpush.msra.mxu3 %v2464_v7 }
  0xce   : > { %v295_v55 = vpop.f32.mrf.mxu0 }
  0xcf   : > { %v358_v51 = vadd.f32 %v295_v55, %v274_v53  ;;  %v315_v56 = vpop.f32.mrf.mxu1 }
  0xd0   : > { %v359_v49 = vadd.f32 %v315_v56, %v275_v52 }
  0xd1   : > { %v1652_v57 = vmul.f32 -1.442695, %v358_v51 }
  0xd2   : > { %v1653_v48 = vmul.f32 -1.442695, %v359_v49 }
  0xd3   : > { %1806 = vpow2.f32 %v1652_v57 }
  0xd4   : > { %1808 = vpow2.f32 %v1653_v48 }
  0xd5   : > { %v335_v45 = vpop.f32.mrf.mxu2 }
  0xd6   : > { %v360_v44 = vadd.f32 %v335_v45, %v276_v47  ;;  %v277_v45 = vld [vmem:[%s2244_s15 + $0x18] sm:$0xff] }
  0xd8   : > { %v1654_v62 = vmul.f32 -1.442695, %v360_v44 }
  0xd9   : > { %v1807_v43 = vpop.eup %1806 }
  0xda   : > { %v1809_v63 = vpop.eup %1808  ;;  %v365_v0 = vadd.f32 1.0, %v1807_v43  ;;  %1810 = vpow2.f32 %v1654_v62 }
  0xdb   : > { %v384_v7 = vadd.f32 1.0, %v1809_v63 }
  0xdc   : > { %1812 = vrcp.f32 %v365_v0  ;;  %v377_v48 = vand.u32 2147483648, %v365_v0  ;;  %v375_v41 = vand.u32 2147483647, %v365_v0  ;;  %vm371_vm2 = vweird.f32 %v365_v0 }
  0xdd   : > { %1814 = vrcp.f32 %v384_v7  ;;  %v396_v43 = vand.u32 2147483648, %v384_v7  ;;  %v394_v63 = vand.u32 2147483647, %v384_v7  ;;  %vm390_vm3 = vweird.f32 %v384_v7 }
  0xde   : > { %vm376_vm5 = vcmp.eq.f32.partialorder %v375_v41, 8.507059e+37 }
  0xdf   : > { %v355_v44 = vpop.f32.mrf.mxu3  ;;  %vm395_vm7 = vcmp.eq.f32.partialorder %v394_v63, 8.507059e+37  ;;  %v3374_v63 = vld [vmem:[#allocation20_spill] sm:$0xff] }
  0xe0   : > { %v1811_v61 = vpop.eup %1810  ;;  %v361_v37 = vadd.f32 %v355_v44, %v277_v45 }
  0xe1   : > { %v403_v53 = vadd.f32 1.0, %v1811_v61 }
  0xe2   : > { %v1813_v55 = vpop.eup %1812 }
  0xe3   : > { %v1815_v52 = vpop.eup %1814  ;;  %v367_v51 = vmul.f32 %v1813_v55, %v365_v0  ;;  %1816 = vrcp.f32 %v403_v53  ;;  %vm372_vm0 = vweird.f32 %v1813_v55  ;;  %v415_v32 = vand.u32 2147483648, %v403_v53 }
  0xe4   : > { %v386_v49 = vmul.f32 %v1815_v52, %v384_v7  ;;  %vm391_vm1 = vweird.f32 %v1815_v52  ;;  %vm373_vm4 = vmor %vm371_vm2, %vm372_vm0  ;;  %v413_v7 = vand.u32 2147483647, %v403_v53  ;;  %vm409_vm9 = vweird.f32 %v403_v53 }
  0xe5   : > { %v368_v56 = vsub.f32 1.0, %v367_v51  ;;  %v378_v51 = vor.u32 1.1754944e-38, %v377_v48  ;;  %vm392_vm6 = vmor %vm390_vm3, %vm391_vm1 }
  0xe6   : > { %v387_v57 = vsub.f32 1.0, %v386_v49  ;;  %vm414_vm11 = vcmp.eq.f32.partialorder %v413_v7, 8.507059e+37  ;;  %v3382_v7 = vld [vmem:[#allocation26_spill] sm:$0xff] }
  0xe7   : > { %v369_v47 = vmul.f32 %v1813_v55, %v368_v56  ;;  %v397_v56 = vor.u32 1.1754944e-38, %v396_v43  ;;  %v3372_v43 = vld [vmem:[#allocation19_spill] sm:$0xff] }
  0xe8   : > { %v388_v62 = vmul.f32 %v1815_v52, %v387_v57 }
  0xe9   : > { %v1817_v40 = vpop.eup %1816  ;;  %v370_v39 = vadd.f32 %v1813_v55, %v369_v47 }
  0xea   : > { %v405_v61 = vmul.f32 %v1817_v40, %v403_v53  ;;  %v389_v36 = vadd.f32 %v1815_v52, %v388_v62  ;;  %vm410_vm8 = vweird.f32 %v1817_v40  ;;  %v3371_v53 = vld [vmem:[#allocation18_spill] sm:$0xff]  ;;  %v3373_v62 = vld [vmem:[#allocation37_spill] sm:$0xff] }
  0xeb   : > { %v374_v49 = vsel %vm373_vm4, %v1813_v55, %v370_v39  ;;  %vm411_vm10 = vmor %vm409_vm9, %vm410_vm8  ;;  %v416_v39 = vor.u32 1.1754944e-38, %v415_v32  ;;  %v3367_v32 = vld [vmem:[#allocation15_spill] sm:$0xff] }
  0xec   : > { %v406_v35 = vsub.f32 1.0, %v405_v61  ;;  %v379_v59 = vsel %vm376_vm5, %v378_v51, %v374_v49  ;;  %v393_v33 = vsel %vm392_vm6, %v1815_v52, %v389_v36  ;;  %v3375_v61 = vld [vmem:[#allocation21_spill] sm:$0xff]  ;;  %v3376_v51 = vld [vmem:[#allocation22_spill] sm:$0xff] }
  0xed   : > { %v398_v57 = vsel %vm395_vm7, %v397_v56, %v393_v33  ;;  %v419_v47 = vmul.f32 %v379_v59, %v273_v60  ;;  %v3366_v33 = vld [vmem:[#allocation35_spill] sm:$0xff]  ;;  %v3370_v60 = vld [vmem:[#allocation17_spill] sm:$0xff]  ;;  %v3377_v49 = vld [vmem:[#allocation38_spill] sm:$0xff] }
  0xee   : > { %v407_v0 = vmul.f32 %v1817_v40, %v406_v35  ;;  %v420_v45 = vmul.f32 %v398_v57, %v361_v37  ;;  %v3368_v37 = vld [vmem:[#allocation16_spill] sm:$0xff]  ;;  %v3378_v56 = vld [vmem:[#allocation23_spill] sm:$0xff] }
  0xef   : > { %v3379_v57 = vld [vmem:[#allocation24_spill] sm:$0xff] }
  0xf0   : > { %v408_v44 = vadd.f32 %v1817_v40, %v407_v0  ;;  %v2588_v48 = vadd.f32 %v420_v45, %v419_v47  ;;  %v3380_v47 = vld [vmem:[#allocation25_spill] sm:$0xff]  ;;  %v3381_v0 = vld [vmem:[#allocation39_spill] sm:$0xff] }
  0xf1   : > { %v3383_v45 = vld [vmem:[#allocation27_spill] sm:$0xff] }
  0xf2   : > { %v412_v41 = vsel %vm411_vm10, %v1817_v40, %v408_v44  ;;  %426 = vst [vmem:[%s2255_s27] sm:$0xff] %v2588_v48  ;;  %v3369_v40 = vld [vmem:[#allocation36_spill] sm:$0xff] }
  0xf3   : > { %v417_v36 = vsel %vm414_vm11, %v416_v39, %v412_v41  ;;  %v3384_v44 = vld [vmem:[#allocation28_spill] sm:$0xff]  ;;  %v3386_v41 = vld [vmem:[#allocation29_spill] sm:$0xff] }
  0xf4   : > { %v422_v55 = vsub.f32 1.0, %v417_v36  ;;  %v424_v35 = vmul.f32 %v2588_v48, %v417_v36  ;;  %v3385_v39 = vld [vmem:[#allocation40_spill] sm:$0xff]  ;;  %v3387_v36 = vld [vmem:[#allocation30_spill] sm:$0xff] }
  0xf6   : > { %v423_v52 = vmul.f32 %v422_v55, %v3366_v33  ;;  %v3388_v55 = vld [vmem:[#allocation31_spill] sm:$0xff]  ;;  %v3389_v33 = vld [vmem:[#allocation41_spill] sm:$0xff] }
  0xf8   : > { %v2594_v59 = vadd.f32 %v424_v35, %v423_v52  ;;  %v3390_v52 = vld [vmem:[#allocation32_spill] sm:$0xff]  ;;  %v3391_v35 = vld [vmem:[#allocation33_spill] sm:$0xff] }
  0xfa   : > { %427 = vst [vmem:[%s2255_s27 + $0x8] sm:$0xff] %v2594_v59  ;;  %449 = vmatmul.f32.vlgmr.msrb.gmra.mxu0 %v2594_v59  ;;  %469 = vmatmul.f32.vlgmr.msrb.gmra.mxu1 %v2594_v59 }
  0xfb   : > { %489 = vmatmul.f32.vlgmr.msrb.gmra.mxu2 %v2594_v59  ;;  %509 = vmatmul.f32.vlgmr.msrb.gmra.mxu3 %v2594_v59 }
  0xfc   : > { %745 = vmatpush.msrb.mxu0 %v2258_v1  ;;  %765 = vmatpush.msrb.mxu1 %v2260_v2 }
  0xfd   : > { %785 = vmatpush.msrb.mxu2 %v2262_v3  ;;  %805 = vmatpush.msrb.mxu3 %v2322_v24 }
  0xfe   : > { %746 = vmatpush.msrb.mxu0 %v2266_v4  ;;  %766 = vmatpush.msrb.mxu1 %v2268_v5 }
  0xff   : > { %786 = vmatpush.msrb.mxu2 %v2270_v6  ;;  %806 = vmatpush.msrb.mxu3 %v2328_v26 }
 0x100   : > { %747 = vmatpush.msrb.mxu0 %v3365_v58  ;;  %767 = vmatpush.msrb.mxu1 %v2275_v8 }
 0x101   : > { %787 = vmatpush.msrb.mxu2 %v2279_v9  ;;  %807 = vmatpush.msrb.mxu3 %v2340_v30 }
 0x102   : > { %748 = vmatpush.msrb.mxu0 %v2282_v10  ;;  %768 = vmatpush.msrb.mxu1 %v2284_v11 }
 0x103   : > { %788 = vmatpush.msrb.mxu2 %v2288_v12  ;;  %808 = vmatpush.msrb.mxu3 %v2352_v34 }
 0x104   : > { %749 = vmatpush.msrb.mxu0 %v2291_v13  ;;  %769 = vmatpush.msrb.mxu1 %v2293_v14 }
 0x105   : > { %789 = vmatpush.msrb.mxu2 %v2297_v15  ;;  %809 = vmatpush.msrb.mxu3 %v2364_v38 }
 0x106   : > { %750 = vmatpush.msrb.mxu0 %v2300_v16  ;;  %770 = vmatpush.msrb.mxu1 %v2302_v17 }
 0x107   : > { %790 = vmatpush.msrb.mxu2 %v2306_v18  ;;  %810 = vmatpush.msrb.mxu3 %v2376_v42 }
 0x108   : > { %751 = vmatpush.msrb.mxu0 %v2309_v19  ;;  %771 = vmatpush.msrb.mxu1 %v2311_v20 }
 0x109   : > { %791 = vmatpush.msrb.mxu2 %v2315_v21  ;;  %811 = vmatpush.msrb.mxu3 %v2388_v46 }
 0x10a   : > { %752 = vmatpush.msrb.mxu0 %v2318_v22  ;;  %772 = vmatpush.msrb.mxu1 %v2320_v23 }
 0x10b   : > { %792 = vmatpush.msrb.mxu2 %v2326_v25  ;;  %812 = vmatpush.msrb.mxu3 %v2400_v50 }
 0x10c   : > { %753 = vmatpush.msrb.mxu0 %v2331_v27  ;;  %773 = vmatpush.msrb.mxu1 %v2333_v28 }
 0x10d   : > { %793 = vmatpush.msrb.mxu2 %v2338_v29  ;;  %813 = vmatpush.msrb.mxu3 %v2412_v54 }
 0x10e   : > { %754 = vmatpush.msrb.mxu0 %v2343_v31  ;;  %774 = vmatpush.msrb.mxu1 %v3367_v32 }
 0x10f   : > { %794 = vmatpush.msrb.mxu2 %v3368_v37  ;;  %814 = vmatpush.msrb.mxu3 %v3369_v40 }
 0x110   : > { %755 = vmatpush.msrb.mxu0 %v3370_v60  ;;  %775 = vmatpush.msrb.mxu1 %v3371_v53 }
 0x111   : > { %795 = vmatpush.msrb.mxu2 %v3372_v43  ;;  %815 = vmatpush.msrb.mxu3 %v3373_v62 }
 0x112   : > { %756 = vmatpush.msrb.mxu0 %v3374_v63  ;;  %776 = vmatpush.msrb.mxu1 %v3375_v61 }
 0x113   : > { %796 = vmatpush.msrb.mxu2 %v3376_v51  ;;  %816 = vmatpush.msrb.mxu3 %v3377_v49 }
 0x114   : > { %757 = vmatpush.msrb.mxu0 %v3378_v56  ;;  %777 = vmatpush.msrb.mxu1 %v3379_v57 }
 0x115   : > { %797 = vmatpush.msrb.mxu2 %v3380_v47  ;;  %817 = vmatpush.msrb.mxu3 %v3381_v0  ;;  %v1656_v0 = vld [vmem:[%s2244_s15 + $0x28] sm:$0xff] }
 0x116   : > { %758 = vmatpush.msrb.mxu0 %v3382_v7  ;;  %778 = vmatpush.msrb.mxu1 %v3383_v45  ;;  %v3392_v7 = vld [vmem:[#allocation34_spill] sm:$0xff] }
 0x117   : > { %798 = vmatpush.msrb.mxu2 %v3384_v44  ;;  %818 = vmatpush.msrb.mxu3 %v3385_v39  ;;  %v3393_v45 = vld [vmem:[#allocation42_spill] sm:$0xff]  ;;  %v1655_v44 = vld [vmem:[%s2244_s15 + $0x20] sm:$0xff] }
 0x118   : > { %759 = vmatpush.msrb.mxu0 %v3386_v41  ;;  %779 = vmatpush.msrb.mxu1 %v3387_v36 }
 0x119   : > { %799 = vmatpush.msrb.mxu2 %v3388_v55  ;;  %819 = vmatpush.msrb.mxu3 %v3389_v33  ;;  %v1657_v55 = vld [vmem:[%s2244_s15 + $0x30] sm:$0xff] }
 0x11a   : > { %760 = vmatpush.msrb.mxu0 %v3390_v52  ;;  %780 = vmatpush.msrb.mxu1 %v3391_v35 }
 0x11b   : > { %800 = vmatpush.msrb.mxu2 %v3392_v7  ;;  %820 = vmatpush.msrb.mxu3 %v3393_v45 }
 0x177   : > { %v450_v39 = vpop.f32.mrf.mxu0  ;;  %v470_v47 = vpop.f32.mrf.mxu1 }
 0x178   : > { %v513_v41 = vadd.f32 %v1655_v44, %v450_v39  ;;  %v514_v57 = vadd.f32 %v1656_v0, %v470_v47 }
 0x17a   : > { %v1659_v36 = vmul.f32 -1.442695, %v513_v41  ;;  %v1660_v56 = vmul.f32 -1.442695, %v514_v57 }
 0x17c   : > { %1818 = vpow2.f32 %v1659_v36 }
 0x17d   : > { %1820 = vpow2.f32 %v1660_v56 }
 0x17e   : > { %v490_v33 = vpop.f32.mrf.mxu2 }
 0x17f   : > { %v515_v49 = vadd.f32 %v1657_v55, %v490_v33  ;;  %v510_v33 = vpop.f32.mrf.mxu3 }
 0x181   : > { %v1661_v52 = vmul.f32 -1.442695, %v515_v49 }
 0x182   : > { %v1819_v51 = vpop.eup %1818 }
 0x183   : > { %v1821_v35 = vpop.eup %1820  ;;  %v520_v61 = vadd.f32 1.0, %v1819_v51  ;;  %1822 = vpow2.f32 %v1661_v52  ;;  %v1658_v51 = vld [vmem:[%s2244_s15 + $0x38] sm:$0xff] }
 0x184   : > { %v539_v7 = vadd.f32 1.0, %v1821_v35 }
 0x185   : > { %1824 = vrcp.f32 %v520_v61  ;;  %v532_v56 = vand.u32 2147483648, %v520_v61  ;;  %v530_v49 = vand.u32 2147483647, %v520_v61  ;;  %vm526_vm14 = vweird.f32 %v520_v61 }
 0x186   : > { %1826 = vrcp.f32 %v539_v7  ;;  %v551_v55 = vand.u32 2147483648, %v539_v7  ;;  %v549_v35 = vand.u32 2147483647, %v539_v7  ;;  %vm545_vm0 = vweird.f32 %v539_v7 }
 0x187   : > { %v533_v53 = vor.u32 1.1754944e-38, %v532_v56  ;;  %vm531_vm1 = vcmp.eq.f32.partialorder %v530_v49, 8.507059e+37 }
 0x188   : > { %vm550_vm3 = vcmp.eq.f32.partialorder %v549_v35, 8.507059e+37 }
 0x189   : > { %v1823_v45 = vpop.eup %1822 }
 0x18a   : > { %v558_v63 = vadd.f32 1.0, %v1823_v45 }
 0x18b   : > { %v1825_v44 = vpop.eup %1824 }
 0x18c   : > { %v1827_v47 = vpop.eup %1826  ;;  %v522_v0 = vmul.f32 %v1825_v44, %v520_v61  ;;  %1828 = vrcp.f32 %v558_v63  ;;  %vm527_vm12 = vweird.f32 %v1825_v44  ;;  %v570_v31 = vand.u32 2147483648, %v558_v63 }
 0x18d   : > { %v541_v57 = vmul.f32 %v1827_v47, %v539_v7  ;;  %vm546_vm13 = vweird.f32 %v1827_v47  ;;  %vm528_vm15 = vmor %vm526_vm14, %vm527_vm12  ;;  %v568_v56 = vand.u32 2147483647, %v558_v63  ;;  %vm564_vm5 = vweird.f32 %v558_v63 }
 0x18e   : > { %v523_v39 = vsub.f32 1.0, %v522_v0  ;;  %v516_v0 = vadd.f32 %v1658_v51, %v510_v33  ;;  %vm547_vm2 = vmor %vm545_vm0, %vm546_vm13 }
 0x18f   : > { %v542_v41 = vsub.f32 1.0, %v541_v57  ;;  %v552_v57 = vor.u32 1.1754944e-38, %v551_v55  ;;  %vm569_vm7 = vcmp.eq.f32.partialorder %v568_v56, 8.507059e+37 }
 0x190   : > { %v524_v36 = vmul.f32 %v1825_v44, %v523_v39 }
 0x191   : > { %v543_v52 = vmul.f32 %v1827_v47, %v542_v41 }
 0x192   : > { %v1829_v62 = vpop.eup %1828  ;;  %v525_v43 = vadd.f32 %v1825_v44, %v524_v36 }
 0x193   : > { %v560_v45 = vmul.f32 %v1829_v62, %v558_v63  ;;  %v544_v60 = vadd.f32 %v1827_v47, %v543_v52  ;;  %vm565_vm4 = vweird.f32 %v1829_v62 }
 0x194   : > { %v529_v40 = vsel %vm528_vm15, %v1825_v44, %v525_v43  ;;  %vm566_vm6 = vmor %vm564_vm5, %vm565_vm4  ;;  %v571_v44 = vor.u32 1.1754944e-38, %v570_v31  ;;  %v1665_v31 = vld [vmem:[%s2244_s15 + $0x48] sm:$0xff] }
 0x195   : > { %v561_v39 = vsub.f32 1.0, %v560_v45  ;;  %v534_v37 = vsel %vm531_vm1, %v533_v53, %v529_v40  ;;  %v548_v32 = vsel %vm547_vm2, %v1827_v47, %v544_v60 }
 0x196   : > { %v553_v41 = vsel %vm550_vm3, %v552_v57, %v548_v32  ;;  %v574_v36 = vmul.f32 %v534_v37, %v2588_v48 }
 0x197   : > { %v562_v61 = vmul.f32 %v1829_v62, %v561_v39  ;;  %v575_v52 = vmul.f32 %v553_v41, %v516_v0 }
 0x199   : > { %v563_v7 = vadd.f32 %v1829_v62, %v562_v61  ;;  %v2671_v43 = vadd.f32 %v575_v52, %v574_v36 }
 0x19b   : > { %v567_v49 = vsel %vm566_vm6, %v1829_v62, %v563_v7  ;;  %1662 = vst [vmem:[%s2255_s27 + $0x10] sm:$0xff] %v2671_v43 }
 0x19c   : > { %v572_v40 = vsel %vm569_vm7, %v571_v44, %v567_v49  ;;  %v1667_v44 = vld [vmem:[%s2244_s15 + $0x58] sm:$0xff] }
 0x19d   : > { %v577_v32 = vsub.f32 1.0, %v572_v40  ;;  %v579_v48 = vmul.f32 %v2671_v43, %v572_v40 }
 0x19f   : > { %v578_v60 = vmul.f32 %v577_v32, %v2594_v59 }
 0x1a1   : > { %v2677_v37 = vadd.f32 %v579_v48, %v578_v60 }
 0x1a3   : > { %1663 = vst [vmem:[%s2255_s27 + $0x18] sm:$0xff] %v2677_v37  ;;  %605 = vmatmul.f32.vlgmr.msra.gmra.mxu0 %v2677_v37  ;;  %625 = vmatmul.f32.vlgmr.msra.gmra.mxu1 %v2677_v37 }
 0x1a4   : > { %645 = vmatmul.f32.vlgmr.msra.gmra.mxu2 %v2677_v37  ;;  %665 = vmatmul.f32.vlgmr.msra.gmra.mxu3 %v2677_v37 }
 0x1a5   : > { %901 = vmatpush.msra.mxu0 %v2258_v1  ;;  %921 = vmatpush.msra.mxu1 %v2260_v2  ;;  %v3394_v1 = vld [vmem:[#allocation14_spill] sm:$0xff]  ;;  %v3395_v2 = vld [vmem:[#allocation15_spill] sm:$0xff] }
 0x1a6   : > { %941 = vmatpush.msra.mxu2 %v2262_v3  ;;  %961 = vmatpush.msra.mxu3 %v2322_v24  ;;  %v3396_v3 = vld [vmem:[#allocation16_spill] sm:$0xff]  ;;  %v3416_v24 = vld [vmem:[#allocation31_spill] sm:$0xff] }
 0x1a7   : > { %902 = vmatpush.msra.mxu0 %v2266_v4  ;;  %922 = vmatpush.msra.mxu1 %v2268_v5  ;;  %v3397_v4 = vld [vmem:[#allocation36_spill] sm:$0xff]  ;;  %v3398_v5 = vld [vmem:[#allocation17_spill] sm:$0xff] }
 0x1a8   : > { %942 = vmatpush.msra.mxu2 %v2270_v6  ;;  %962 = vmatpush.msra.mxu3 %v2328_v26  ;;  %v3399_v6 = vld [vmem:[#allocation18_spill] sm:$0xff]  ;;  %v3418_v26 = vld [vmem:[#allocation32_spill] sm:$0xff] }
 0x1a9   : > { %903 = vmatpush.msra.mxu0 %v3365_v58  ;;  %923 = vmatpush.msra.mxu1 %v2275_v8  ;;  %v3400_v8 = vld [vmem:[#allocation19_spill] sm:$0xff] }
 0x1aa   : > { %943 = vmatpush.msra.mxu2 %v2279_v9  ;;  %963 = vmatpush.msra.mxu3 %v2340_v30  ;;  %v3401_v9 = vld [vmem:[#allocation37_spill] sm:$0xff]  ;;  %v1666_v58 = vld [vmem:[%s2244_s15 + $0x50] sm:$0xff] }
 0x1ab   : > { %904 = vmatpush.msra.mxu0 %v2282_v10  ;;  %924 = vmatpush.msra.mxu1 %v2284_v11  ;;  %v3402_v10 = vld [vmem:[#allocation20_spill] sm:$0xff]  ;;  %v3403_v11 = vld [vmem:[#allocation21_spill] sm:$0xff] }
 0x1ac   : > { %944 = vmatpush.msra.mxu2 %v2288_v12  ;;  %964 = vmatpush.msra.mxu3 %v2352_v34  ;;  %v3404_v12 = vld [vmem:[#allocation22_spill] sm:$0xff]  ;;  %v1664_v30 = vld [vmem:[%s2244_s15 + $0x40] sm:$0xff] }
 0x1ad   : > { %905 = vmatpush.msra.mxu0 %v2291_v13  ;;  %925 = vmatpush.msra.mxu1 %v2293_v14  ;;  %v3405_v13 = vld [vmem:[#allocation38_spill] sm:$0xff]  ;;  %v3406_v14 = vld [vmem:[#allocation23_spill] sm:$0xff] }
 0x1ae   : > { %945 = vmatpush.msra.mxu2 %v2297_v15  ;;  %965 = vmatpush.msra.mxu3 %v2364_v38  ;;  %v3407_v15 = vld [vmem:[#allocation24_spill] sm:$0xff] }
 0x1af   : > { %906 = vmatpush.msra.mxu0 %v2300_v16  ;;  %926 = vmatpush.msra.mxu1 %v2302_v17  ;;  %v3408_v16 = vld [vmem:[#allocation25_spill] sm:$0xff]  ;;  %v3409_v17 = vld [vmem:[#allocation39_spill] sm:$0xff] }
 0x1b0   : > { %946 = vmatpush.msra.mxu2 %v2306_v18  ;;  %966 = vmatpush.msra.mxu3 %v2376_v42  ;;  %v3410_v18 = vld [vmem:[#allocation26_spill] sm:$0xff] }
 0x1b1   : > { %907 = vmatpush.msra.mxu0 %v2309_v19  ;;  %927 = vmatpush.msra.mxu1 %v2311_v20  ;;  %v3411_v19 = vld [vmem:[#allocation27_spill] sm:$0xff]  ;;  %v3412_v20 = vld [vmem:[#allocation28_spill] sm:$0xff] }
 0x1b2   : > { %947 = vmatpush.msra.mxu2 %v2315_v21  ;;  %967 = vmatpush.msra.mxu3 %v2388_v46  ;;  %v3413_v21 = vld [vmem:[#allocation40_spill] sm:$0xff] }
 0x1b3   : > { %908 = vmatpush.msra.mxu0 %v2318_v22  ;;  %928 = vmatpush.msra.mxu1 %v2320_v23  ;;  %v3414_v22 = vld [vmem:[#allocation29_spill] sm:$0xff]  ;;  %v3415_v23 = vld [vmem:[#allocation30_spill] sm:$0xff] }
 0x1b4   : > { %948 = vmatpush.msra.mxu2 %v2326_v25  ;;  %968 = vmatpush.msra.mxu3 %v2400_v50  ;;  %v3417_v25 = vld [vmem:[#allocation41_spill] sm:$0xff] }
 0x1b5   : > { %909 = vmatpush.msra.mxu0 %v2331_v27  ;;  %929 = vmatpush.msra.mxu1 %v2333_v28  ;;  %v3419_v27 = vld [vmem:[#allocation33_spill] sm:$0xff]  ;;  %v3420_v28 = vld [vmem:[#allocation34_spill] sm:$0xff] }
 0x1b6   : > { %949 = vmatpush.msra.mxu2 %v2338_v29  ;;  %969 = vmatpush.msra.mxu3 %v2412_v54  ;;  %v3421_v29 = vld [vmem:[#allocation42_spill] sm:$0xff] }
 0x1b7   : > { %910 = vmatpush.msra.mxu0 %v3394_v1  ;;  %930 = vmatpush.msra.mxu1 %v3395_v2 }
 0x1b8   : > { %950 = vmatpush.msra.mxu2 %v3396_v3  ;;  %970 = vmatpush.msra.mxu3 %v3397_v4 }
 0x1b9   : > { %911 = vmatpush.msra.mxu0 %v3398_v5  ;;  %931 = vmatpush.msra.mxu1 %v3399_v6 }
 0x1ba   : > { %951 = vmatpush.msra.mxu2 %v3400_v8  ;;  %971 = vmatpush.msra.mxu3 %v3401_v9 }
 0x1bb   : > { %912 = vmatpush.msra.mxu0 %v3402_v10  ;;  %932 = vmatpush.msra.mxu1 %v3403_v11 }
 0x1bc   : > { %952 = vmatpush.msra.mxu2 %v3404_v12  ;;  %972 = vmatpush.msra.mxu3 %v3405_v13 }
 0x1bd   : > { %913 = vmatpush.msra.mxu0 %v3406_v14  ;;  %933 = vmatpush.msra.mxu1 %v3407_v15 }
 0x1be   : > { %953 = vmatpush.msra.mxu2 %v3408_v16  ;;  %973 = vmatpush.msra.mxu3 %v3409_v17 }
 0x1bf   : > { %914 = vmatpush.msra.mxu0 %v3410_v18  ;;  %934 = vmatpush.msra.mxu1 %v3411_v19 }
 0x1c0   : > { %954 = vmatpush.msra.mxu2 %v3412_v20  ;;  %974 = vmatpush.msra.mxu3 %v3413_v21 }
 0x1c1   : > { %915 = vmatpush.msra.mxu0 %v3414_v22  ;;  %935 = vmatpush.msra.mxu1 %v3415_v23 }
 0x1c2   : > { %955 = vmatpush.msra.mxu2 %v3416_v24  ;;  %975 = vmatpush.msra.mxu3 %v3417_v25  ;;  %v2768_v25 = vld [vmem:[#allocation7 + $0x1e0] sm:$0xff] }
 0x1c3   : > { %916 = vmatpush.msra.mxu0 %v3418_v26  ;;  %936 = vmatpush.msra.mxu1 %v3419_v27  ;;  %v2771_v26 = vld [vmem:[#allocation7 + $0x1e8] sm:$0xff]  ;;  %v2777_v27 = vld [vmem:[#allocation7 + $0x1f8] sm:$0xff] }
 0x1c4   : > { %956 = vmatpush.msra.mxu2 %v3420_v28  ;;  %976 = vmatpush.msra.mxu3 %v3421_v29  ;;  %v2780_v28 = vld [vmem:[#allocation7 + $0x1c0] sm:$0xff]  ;;  %v2783_v29 = vld [vmem:[#allocation7 + $0x1c8] sm:$0xff] }
 0x220   : > { %v606_v34 = vpop.f32.mrf.mxu0  ;;  %v626_v38 = vpop.f32.mrf.mxu1 }
 0x221   : > { %v669_v42 = vadd.f32 %v1664_v30, %v606_v34  ;;  %v670_v46 = vadd.f32 %v1665_v31, %v626_v38  ;;  %v2786_v30 = vld [vmem:[#allocation7 + $0x1d0] sm:$0xff]  ;;  %v2789_v31 = vld [vmem:[#allocation7 + $0x1d8] sm:$0xff]  ;;  %v2792_v34 = vld [vmem:[#allocation7 + $0x1a0] sm:$0xff] }
 0x222   : > { %v2795_v38 = vld [vmem:[#allocation7 + $0x1a8] sm:$0xff] }
 0x223   : > { %v1668_v50 = vmul.f32 -1.442695, %v669_v42  ;;  %v1669_v54 = vmul.f32 -1.442695, %v670_v46  ;;  %v2798_v42 = vld [vmem:[#allocation7 + $0x1b0] sm:$0xff]  ;;  %v2801_v46 = vld [vmem:[#allocation7 + $0x1b8] sm:$0xff] }
 0x225   : > { %1830 = vpow2.f32 %v1668_v50  ;;  %v2804_v50 = vld [vmem:[#allocation7 + $0x180] sm:$0xff] }
 0x226   : > { %1832 = vpow2.f32 %v1669_v54  ;;  %v2807_v54 = vld [vmem:[#allocation7 + $0x188] sm:$0xff] }
 0x227   : > { %v646_v59 = vpop.f32.mrf.mxu2  ;;  %v666_v49 = vpop.f32.mrf.mxu3 }
 0x228   : > { %v671_v53 = vadd.f32 %v1666_v58, %v646_v59  ;;  %v672_v4 = vadd.f32 %v1667_v44, %v666_v49  ;;  %v2810_v58 = vld [vmem:[#allocation7 + $0x190] sm:$0xff]  ;;  %v2813_v59 = vld [vmem:[#allocation7 + $0x198] sm:$0xff] }
 0x229   : > { %v2870_v44 = vld [vmem:[#allocation7 + $0xf0] sm:$0xff]  ;;  %v2873_v49 = vld [vmem:[#allocation7 + $0xf8] sm:$0xff] }
 0x22a   : > { %v1670_v62 = vmul.f32 -1.442695, %v671_v53  ;;  %v2816_v53 = vld [vmem:[#allocation7 + $0x160] sm:$0xff] }
 0x22b   : > { %v1831_v63 = vpop.eup %1830 }
 0x22c   : > { %v1833_v47 = vpop.eup %1832  ;;  %v676_v55 = vadd.f32 1.0, %v1831_v63  ;;  %1834 = vpow2.f32 %v1670_v62  ;;  %v2819_v62 = vld [vmem:[#allocation7 + $0x168] sm:$0xff]  ;;  %v2822_v63 = vld [vmem:[#allocation7 + $0x170] sm:$0xff] }
 0x22d   : > { %v695_v51 = vadd.f32 1.0, %v1833_v47  ;;  %v2825_v47 = vld [vmem:[#allocation7 + $0x178] sm:$0xff] }
 0x22e   : > { %1836 = vrcp.f32 %v676_v55  ;;  %v688_v36 = vand.u32 2147483648, %v676_v55  ;;  %v686_v52 = vand.u32 2147483647, %v676_v55  ;;  %vm682_vm10 = vweird.f32 %v676_v55 }
 0x22f   : > { %1838 = vrcp.f32 %v695_v51  ;;  %v707_v7 = vand.u32 2147483648, %v695_v51  ;;  %v705_v32 = vand.u32 2147483647, %v695_v51  ;;  %vm701_vm12 = vweird.f32 %v695_v51 }
 0x230   : > { %v689_v2 = vor.u32 1.1754944e-38, %v688_v36  ;;  %vm687_vm13 = vcmp.eq.f32.partialorder %v686_v52, 8.507059e+37  ;;  %v2855_v36 = vld [vmem:[#allocation7 + $0x108] sm:$0xff]  ;;  %v2864_v52 = vld [vmem:[#allocation7 + $0xe0] sm:$0xff] }
 0x231   : > { %v708_v6 = vor.u32 1.1754944e-38, %v707_v7  ;;  %vm706_vm15 = vcmp.eq.f32.partialorder %v705_v32, 8.507059e+37  ;;  %v2867_v7 = vld [vmem:[#allocation7 + $0xe8] sm:$0xff] }
 0x232   : > { %v1835_v33 = vpop.eup %1834  ;;  %v2879_v32 = vld [vmem:[#allocation7 + $0xc8] sm:$0xff] }
 0x233   : > { %v714_v35 = vadd.f32 1.0, %v1835_v33  ;;  %v2834_v33 = vld [vmem:[#allocation7 + $0x150] sm:$0xff]  ;;  %3423 = vst [vmem:[#allocation35_spill] sm:$0xff] %v2879_v32 }
 0x234   : > { %v1837_v45 = vpop.eup %1836 }
 0x235   : > { %v1839_v0 = vpop.eup %1838  ;;  %v678_v57 = vmul.f32 %v1837_v45, %v676_v55  ;;  %1840 = vrcp.f32 %v714_v35  ;;  %vm683_vm8 = vweird.f32 %v1837_v45  ;;  %v726_v12 = vand.u32 2147483648, %v714_v35  ;;  %v2828_v55 = vld [vmem:[#allocation7 + $0x140] sm:$0xff] }
 0x236   : > { %v697_v39 = vmul.f32 %v1839_v0, %v695_v51  ;;  %vm702_vm9 = vweird.f32 %v1839_v0  ;;  %vm684_vm11 = vmor %vm682_vm10, %vm683_vm8  ;;  %v724_v15 = vand.u32 2147483647, %v714_v35  ;;  %vm720_vm1 = vweird.f32 %v714_v35  ;;  %v2831_v51 = vld [vmem:[#allocation7 + $0x148] sm:$0xff] }
 0x237   : > { %v679_v41 = vsub.f32 1.0, %v678_v57  ;;  %vm703_vm14 = vmor %vm701_vm12, %vm702_vm9  ;;  %v727_v19 = vor.u32 1.1754944e-38, %v726_v12  ;;  %v2846_v57 = vld [vmem:[#allocation7 + $0x130] sm:$0xff] }
 0x238   : > { %v698_v61 = vsub.f32 1.0, %v697_v39  ;;  %vm725_vm3 = vcmp.eq.f32.partialorder %v724_v15, 8.507059e+37  ;;  %v2849_v39 = vld [vmem:[#allocation7 + $0x138] sm:$0xff]  ;;  %v2918_v12 = vld [vmem:[#allocation7 + $0x70] sm:$0xff]  ;;  %v2927_v15 = vld [vmem:[#allocation7 + $0x48] sm:$0xff] }
 0x239   : > { %v680_v56 = vmul.f32 %v1837_v45, %v679_v41  ;;  %v2852_v41 = vld [vmem:[#allocation7 + $0x100] sm:$0xff]  ;;  %3436 = vst [vmem:[#allocation23_spill] sm:$0xff] %v2918_v12 }
 0x23a   : > { %v699_v40 = vmul.f32 %v1839_v0, %v698_v61  ;;  %v2858_v61 = vld [vmem:[#allocation7 + $0x110] sm:$0xff]  ;;  %3439 = vst [vmem:[#allocation39_spill] sm:$0xff] %v2927_v15 }
 0x23b   : > { %v1841_v60 = vpop.eup %1840  ;;  %v681_v48 = vadd.f32 %v1837_v45, %v680_v56  ;;  %v2861_v56 = vld [vmem:[#allocation7 + $0x118] sm:$0xff] }
 0x23c   : > { %v716_v1 = vmul.f32 %v1841_v60, %v714_v35  ;;  %v700_v3 = vadd.f32 %v1839_v0, %v699_v40  ;;  %vm721_vm0 = vweird.f32 %v1841_v60  ;;  %v2837_v35 = vld [vmem:[#allocation7 + $0x158] sm:$0xff]  ;;  %v2876_v40 = vld [vmem:[#allocation7 + $0xc0] sm:$0xff] }
 0x23d   : > { %v685_v5 = vsel %vm684_vm11, %v1837_v45, %v681_v48  ;;  %vm722_vm2 = vmor %vm720_vm1, %vm721_vm0  ;;  %v2840_v45 = vld [vmem:[#allocation7 + $0x120] sm:$0xff]  ;;  %3422 = vst [vmem:[#allocation13_spill] sm:$0xff] %v2876_v40  ;;  %v2885_v48 = vld [vmem:[#allocation7 + $0xd8] sm:$0xff] }
 0x23e   : > { %v717_v8 = vsub.f32 1.0, %v716_v1  ;;  %v690_v9 = vsel %vm687_vm13, %v689_v2, %v685_v5  ;;  %v704_v10 = vsel %vm703_vm14, %v1839_v0, %v700_v3  ;;  %v2843_v0 = vld [vmem:[#allocation7 + $0x128] sm:$0xff]  ;;  %3425 = vst [vmem:[#allocation15_spill] sm:$0xff] %v2885_v48  ;;  %v2888_v1 = vld [vmem:[#allocation7 + $0xa0] sm:$0xff]  ;;  %v2894_v3 = vld [vmem:[#allocation7 + $0xb0] sm:$0xff] }
 0x23f   : > { %v709_v11 = vsel %vm706_vm15, %v708_v6, %v704_v10  ;;  %v730_v13 = vmul.f32 %v690_v9, %v2671_v43  ;;  %3426 = vst [vmem:[#allocation16_spill] sm:$0xff] %v2888_v1  ;;  %v2891_v2 = vld [vmem:[#allocation7 + $0xa8] sm:$0xff]  ;;  %v2900_v5 = vld [vmem:[#allocation7 + $0x80] sm:$0xff]  ;;  %v2909_v9 = vld [vmem:[#allocation7 + $0x98] sm:$0xff] }
 0x240   : > { %v718_v14 = vmul.f32 %v1841_v60, %v717_v8  ;;  %v731_v16 = vmul.f32 %v709_v11, %v672_v4  ;;  %3427 = vst [vmem:[#allocation36_spill] sm:$0xff] %v2891_v2  ;;  %v2897_v4 = vld [vmem:[#allocation7 + $0xb8] sm:$0xff]  ;;  %v2903_v6 = vld [vmem:[#allocation7 + $0x88] sm:$0xff]  ;;  %v2906_v8 = vld [vmem:[#allocation7 + $0x90] sm:$0xff] }
 0x241   : > { %3428 = vst [vmem:[#allocation17_spill] sm:$0xff] %v2894_v3  ;;  %v2912_v10 = vld [vmem:[#allocation7 + $0x60] sm:$0xff]  ;;  %v2915_v11 = vld [vmem:[#allocation7 + $0x68] sm:$0xff] }
 0x242   : > { %v719_v17 = vadd.f32 %v1841_v60, %v718_v14  ;;  %v2754_v18 = vadd.f32 %v731_v16, %v730_v13  ;;  %3429 = vst [vmem:[#allocation18_spill] sm:$0xff] %v2897_v4  ;;  %v2921_v13 = vld [vmem:[#allocation7 + $0x78] sm:$0xff]  ;;  %v2924_v14 = vld [vmem:[#allocation7 + $0x40] sm:$0xff]  ;;  %v2930_v16 = vld [vmem:[#allocation7 + $0x50] sm:$0xff] }
 0x243   : > { %3430 = vst [vmem:[#allocation19_spill] sm:$0xff] %v2900_v5 }
 0x244   : > { %v723_v20 = vsel %vm722_vm2, %v1841_v60, %v719_v17  ;;  %1671 = vst [vmem:[%s2255_s27 + $0x20] sm:$0xff] %v2754_v18  ;;  %v2882_v60 = vld [vmem:[#allocation7 + $0xd0] sm:$0xff]  ;;  %v2933_v17 = vld [vmem:[#allocation7 + $0x58] sm:$0xff] }
 0x245   : > { %v728_v21 = vsel %vm725_vm3, %v727_v19, %v723_v20  ;;  %3424 = vst [vmem:[#allocation14_spill] sm:$0xff] %v2882_v60  ;;  %v2936_v19 = vld [vmem:[#allocation7 + $0x20] sm:$0xff]  ;;  %v2939_v20 = vld [vmem:[#allocation7 + $0x28] sm:$0xff] }
 0x246   : > { %v733_v22 = vsub.f32 1.0, %v728_v21  ;;  %v735_v43 = vmul.f32 %v2754_v18, %v728_v21  ;;  %3431 = vst [vmem:[#allocation37_spill] sm:$0xff] %v2903_v6  ;;  %v2942_v21 = vld [vmem:[#allocation7 + $0x30] sm:$0xff] }
 0x247   : > { %3432 = vst [vmem:[#allocation20_spill] sm:$0xff] %v2906_v8 }
 0x248   : > { %v734_v23 = vmul.f32 %v733_v22, %v2677_v37  ;;  %v2774_v37 = vld [vmem:[#allocation7 + $0x1f0] sm:$0xff]  ;;  %3433 = vst [vmem:[#allocation21_spill] sm:$0xff] %v2909_v9  ;;  %v2945_v22 = vld [vmem:[#allocation7 + $0x38] sm:$0xff] }
 0x249   : > { %3434 = vst [vmem:[#allocation22_spill] sm:$0xff] %v2912_v10 }
 0x24a   : > { %v2760_v24 = vadd.f32 %v735_v43, %v734_v23  ;;  %3435 = vst [vmem:[#allocation38_spill] sm:$0xff] %v2915_v11  ;;  %v2948_v23 = vld [vmem:[#allocation7] sm:$0xff]  ;;  %v2951_v43 = vld [vmem:[#allocation7 + $0x8] sm:$0xff] }
 0x24b   : > { %3437 = vst [vmem:[#allocation24_spill] sm:$0xff] %v2921_v13 }
 0x24c   : > { %1672 = vst [vmem:[%s2255_s27 + $0x28] sm:$0xff] %v2760_v24  ;;  %761 = vmatmul.f32.vlgmr.msrb.gmra.mxu0 %v2760_v24  ;;  %781 = vmatmul.f32.vlgmr.msrb.gmra.mxu1 %v2760_v24 }
 0x24d   : > { %801 = vmatmul.f32.vlgmr.msrb.gmra.mxu2 %v2760_v24  ;;  %821 = vmatmul.f32.vlgmr.msrb.gmra.mxu3 %v2760_v24  ;;  %3438 = vst [vmem:[#allocation25_spill] sm:$0xff] %v2924_v14 }
 0x24e   : > { %1057 = vmatpush.msrb.mxu0 %v2768_v25  ;;  %1077 = vmatpush.msrb.mxu1 %v2771_v26  ;;  %3440 = vst [vmem:[#allocation26_spill] sm:$0xff] %v2930_v16 }
 0x24f   : > { %1097 = vmatpush.msrb.mxu2 %v2774_v37  ;;  %1117 = vmatpush.msrb.mxu3 %v2777_v27  ;;  %3441 = vst [vmem:[#allocation27_spill] sm:$0xff] %v2933_v17 }
 0x250   : > { %1058 = vmatpush.msrb.mxu0 %v2780_v28  ;;  %1078 = vmatpush.msrb.mxu1 %v2783_v29  ;;  %3442 = vst [vmem:[#allocation28_spill] sm:$0xff] %v2936_v19 }
 0x251   : > { %1098 = vmatpush.msrb.mxu2 %v2786_v30  ;;  %1118 = vmatpush.msrb.mxu3 %v2789_v31  ;;  %3443 = vst [vmem:[#allocation40_spill] sm:$0xff] %v2939_v20 }
 0x252   : > { %1059 = vmatpush.msrb.mxu0 %v2792_v34  ;;  %1079 = vmatpush.msrb.mxu1 %v2795_v38  ;;  %3444 = vst [vmem:[#allocation29_spill] sm:$0xff] %v2942_v21 }
 0x253   : > { %1099 = vmatpush.msrb.mxu2 %v2798_v42  ;;  %1119 = vmatpush.msrb.mxu3 %v2801_v46  ;;  %3445 = vst [vmem:[#allocation30_spill] sm:$0xff] %v2945_v22 }
 0x254   : > { %1060 = vmatpush.msrb.mxu0 %v2804_v50  ;;  %1080 = vmatpush.msrb.mxu1 %v2807_v54  ;;  %3446 = vst [vmem:[#allocation31_spill] sm:$0xff] %v2948_v23 }
 0x255   : > { %1100 = vmatpush.msrb.mxu2 %v2810_v58  ;;  %1120 = vmatpush.msrb.mxu3 %v2813_v59  ;;  %3447 = vst [vmem:[#allocation41_spill] sm:$0xff] %v2951_v43 }
 0x256   : > { %1061 = vmatpush.msrb.mxu0 %v2816_v53  ;;  %1081 = vmatpush.msrb.mxu1 %v2819_v62 }
 0x257   : > { %1101 = vmatpush.msrb.mxu2 %v2822_v63  ;;  %1121 = vmatpush.msrb.mxu3 %v2825_v47 }
 0x258   : > { %1062 = vmatpush.msrb.mxu0 %v2828_v55  ;;  %1082 = vmatpush.msrb.mxu1 %v2831_v51 }
 0x259   : > { %1102 = vmatpush.msrb.mxu2 %v2834_v33  ;;  %1122 = vmatpush.msrb.mxu3 %v2837_v35 }
 0x25a   : > { %1063 = vmatpush.msrb.mxu0 %v2840_v45  ;;  %1083 = vmatpush.msrb.mxu1 %v2843_v0 }
 0x25b   : > { %1103 = vmatpush.msrb.mxu2 %v2846_v57  ;;  %1123 = vmatpush.msrb.mxu3 %v2849_v39 }
 0x25c   : > { %1064 = vmatpush.msrb.mxu0 %v2852_v41  ;;  %1084 = vmatpush.msrb.mxu1 %v2855_v36 }
 0x25d   : > { %1104 = vmatpush.msrb.mxu2 %v2858_v61  ;;  %1124 = vmatpush.msrb.mxu3 %v2861_v56 }
 0x25e   : > { %1065 = vmatpush.msrb.mxu0 %v2864_v52  ;;  %1085 = vmatpush.msrb.mxu1 %v2867_v7 }
 0x25f   : > { %1105 = vmatpush.msrb.mxu2 %v2870_v44  ;;  %1125 = vmatpush.msrb.mxu3 %v2873_v49 }
 0x260   : > { %1066 = vmatpush.msrb.mxu0 %v2876_v40  ;;  %1086 = vmatpush.msrb.mxu1 %v2879_v32 }
 0x261   : > { %1106 = vmatpush.msrb.mxu2 %v2882_v60  ;;  %1126 = vmatpush.msrb.mxu3 %v2885_v48 }
 0x262   : > { %1067 = vmatpush.msrb.mxu0 %v2888_v1  ;;  %1087 = vmatpush.msrb.mxu1 %v2891_v2 }
 0x263   : > { %1107 = vmatpush.msrb.mxu2 %v2894_v3  ;;  %1127 = vmatpush.msrb.mxu3 %v2897_v4 }
 0x264   : > { %1068 = vmatpush.msrb.mxu0 %v2900_v5  ;;  %1088 = vmatpush.msrb.mxu1 %v2903_v6 }
 0x265   : > { %1108 = vmatpush.msrb.mxu2 %v2906_v8  ;;  %1128 = vmatpush.msrb.mxu3 %v2909_v9 }
 0x266   : > { %1069 = vmatpush.msrb.mxu0 %v2912_v10  ;;  %1089 = vmatpush.msrb.mxu1 %v2915_v11 }
 0x267   : > { %1109 = vmatpush.msrb.mxu2 %v2918_v12  ;;  %1129 = vmatpush.msrb.mxu3 %v2921_v13  ;;  %v1675_v12 = vld [vmem:[%s2244_s15 + $0x70] sm:$0xff] }
 0x268   : > { %1070 = vmatpush.msrb.mxu0 %v2924_v14  ;;  %1090 = vmatpush.msrb.mxu1 %v2927_v15 }
 0x269   : > { %1110 = vmatpush.msrb.mxu2 %v2930_v16  ;;  %1130 = vmatpush.msrb.mxu3 %v2933_v17  ;;  %v1674_v17 = vld [vmem:[%s2244_s15 + $0x68] sm:$0xff] }
 0x26a   : > { %1071 = vmatpush.msrb.mxu0 %v2936_v19  ;;  %1091 = vmatpush.msrb.mxu1 %v2939_v20  ;;  %v2954_v19 = vld [vmem:[#allocation7 + $0x10] sm:$0xff]  ;;  %v2957_v20 = vld [vmem:[#allocation7 + $0x18] sm:$0xff] }
 0x26b   : > { %1111 = vmatpush.msrb.mxu2 %v2942_v21  ;;  %1131 = vmatpush.msrb.mxu3 %v2945_v22  ;;  %3448 = vst [vmem:[#allocation32_spill] sm:$0xff] %v2954_v19  ;;  %v1673_v21 = vld [vmem:[%s2244_s15 + $0x60] sm:$0xff] }
 0x26c   : > { %1072 = vmatpush.msrb.mxu0 %v2948_v23  ;;  %1092 = vmatpush.msrb.mxu1 %v2951_v43  ;;  %3449 = vst [vmem:[#allocation33_spill] sm:$0xff] %v2957_v20 }
 0x26d   : > { %1112 = vmatpush.msrb.mxu2 %v2954_v19  ;;  %1132 = vmatpush.msrb.mxu3 %v2957_v20 }
 0x2c9   : > { %v762_v22 = vpop.f32.mrf.mxu0  ;;  %v782_v16 = vpop.f32.mrf.mxu1 }
 0x2ca   : > { %v825_v15 = vadd.f32 %v1673_v21, %v762_v22  ;;  %v826_v14 = vadd.f32 %v1674_v17, %v782_v16 }
 0x2cc   : > { %v1677_v23 = vmul.f32 -1.442695, %v825_v15  ;;  %v1678_v13 = vmul.f32 -1.442695, %v826_v14 }
 0x2ce   : > { %1842 = vpow2.f32 %v1677_v23 }
 0x2cf   : > { %1844 = vpow2.f32 %v1678_v13 }
 0x2d0   : > { %v802_v43 = vpop.f32.mrf.mxu2 }
 0x2d1   : > { %v827_v11 = vadd.f32 %v1675_v12, %v802_v43 }
 0x2d3   : > { %v1679_v10 = vmul.f32 -1.442695, %v827_v11 }
 0x2d4   : > { %v1843_v9 = vpop.eup %1842 }
 0x2d5   : > { %v1845_v19 = vpop.eup %1844  ;;  %v832_v8 = vadd.f32 1.0, %v1843_v9  ;;  %1846 = vpow2.f32 %v1679_v10  ;;  %v1676_v9 = vld [vmem:[%s2244_s15 + $0x78] sm:$0xff]  ;;  %v822_v10 = vpop.f32.mrf.mxu3 }
 0x2d6   : > { %v851_v6 = vadd.f32 1.0, %v1845_v19 }
 0x2d7   : > { %1848 = vrcp.f32 %v832_v8  ;;  %v844_v13 = vand.u32 2147483648, %v832_v8  ;;  %v842_v11 = vand.u32 2147483647, %v832_v8  ;;  %vm838_vm6 = vweird.f32 %v832_v8 }
 0x2d8   : > { %1850 = vrcp.f32 %v851_v6  ;;  %v863_v23 = vand.u32 2147483648, %v851_v6  ;;  %v861_v43 = vand.u32 2147483647, %v851_v6  ;;  %vm857_vm8 = vweird.f32 %v851_v6 }
 0x2d9   : > { %v845_v2 = vor.u32 1.1754944e-38, %v844_v13  ;;  %vm843_vm9 = vcmp.eq.f32.partialorder %v842_v11, 8.507059e+37 }
 0x2da   : > { %vm862_vm11 = vcmp.eq.f32.partialorder %v861_v43, 8.507059e+37  ;;  %v3459_v43 = vld [vmem:[#allocation37_spill] sm:$0xff] }
 0x2db   : > { %v1847_v20 = vpop.eup %1846 }
 0x2dc   : > { %v870_v5 = vadd.f32 1.0, %v1847_v20 }
 0x2dd   : > { %v1849_v21 = vpop.eup %1848 }
 0x2de   : > { %v1851_v16 = vpop.eup %1850  ;;  %v834_v15 = vmul.f32 %v1849_v21, %v832_v8  ;;  %1852 = vrcp.f32 %v870_v5  ;;  %vm839_vm4 = vweird.f32 %v1849_v21  ;;  %v882_v40 = vand.u32 2147483648, %v870_v5 }
 0x2df   : > { %v853_v14 = vmul.f32 %v1851_v16, %v851_v6  ;;  %vm858_vm5 = vweird.f32 %v1851_v16  ;;  %vm840_vm7 = vmor %vm838_vm6, %vm839_vm4  ;;  %v880_v13 = vand.u32 2147483647, %v870_v5  ;;  %vm876_vm13 = vweird.f32 %v870_v5 }
 0x2e0   : > { %v835_v17 = vsub.f32 1.0, %v834_v15  ;;  %v828_v15 = vadd.f32 %v1676_v9, %v822_v10  ;;  %vm859_vm10 = vmor %vm857_vm8, %vm858_vm5  ;;  %v3457_v9 = vld [vmem:[#allocation18_spill] sm:$0xff]  ;;  %v3458_v10 = vld [vmem:[#allocation19_spill] sm:$0xff] }
 0x2e1   : > { %v854_v22 = vsub.f32 1.0, %v853_v14  ;;  %v864_v14 = vor.u32 1.1754944e-38, %v863_v23  ;;  %vm881_vm15 = vcmp.eq.f32.partialorder %v880_v13, 8.507059e+37  ;;  %v3456_v23 = vld [vmem:[#allocation17_spill] sm:$0xff]  ;;  %v3467_v13 = vld [vmem:[#allocation39_spill] sm:$0xff] }
 0x2e2   : > { %v836_v12 = vmul.f32 %v1849_v21, %v835_v17 }
 0x2e3   : > { %v855_v19 = vmul.f32 %v1851_v16, %v854_v22 }
 0x2e4   : > { %v1853_v4 = vpop.eup %1852  ;;  %v837_v3 = vadd.f32 %v1849_v21, %v836_v12 }
 0x2e5   : > { %v872_v20 = vmul.f32 %v1853_v4, %v870_v5  ;;  %v856_v1 = vadd.f32 %v1851_v16, %v855_v19  ;;  %vm877_vm12 = vweird.f32 %v1853_v4  ;;  %v3454_v5 = vld [vmem:[#allocation16_spill] sm:$0xff] }
 0x2e6   : > { %v841_v48 = vsel %vm840_vm7, %v1849_v21, %v837_v3  ;;  %vm878_vm14 = vmor %vm876_vm13, %vm877_vm12  ;;  %v883_v21 = vor.u32 1.1754944e-38, %v882_v40  ;;  %v3451_v40 = vld [vmem:[#allocation35_spill] sm:$0xff] }
 0x2e7   : > { %v873_v17 = vsub.f32 1.0, %v872_v20  ;;  %v846_v60 = vsel %vm843_vm9, %v845_v2, %v841_v48  ;;  %v860_v32 = vsel %vm859_vm10, %v1851_v16, %v856_v1  ;;  %v3452_v2 = vld [vmem:[#allocation14_spill] sm:$0xff]  ;;  %v3455_v16 = vld [vmem:[#allocation36_spill] sm:$0xff] }
 0x2e8   : > { %v865_v22 = vsel %vm862_vm11, %v864_v14, %v860_v32  ;;  %v886_v12 = vmul.f32 %v846_v60, %v2754_v18  ;;  %v3460_v20 = vld [vmem:[#allocation20_spill] sm:$0xff]  ;;  %v3462_v14 = vld [vmem:[#allocation22_spill] sm:$0xff] }
 0x2e9   : > { %v874_v8 = vmul.f32 %v1853_v4, %v873_v17  ;;  %v887_v19 = vmul.f32 %v865_v22, %v828_v15  ;;  %v3461_v15 = vld [vmem:[#allocation21_spill] sm:$0xff]  ;;  %v3463_v17 = vld [vmem:[#allocation38_spill] sm:$0xff]  ;;  %v3464_v22 = vld [vmem:[#allocation23_spill] sm:$0xff] }
 0x2eb   : > { %v875_v6 = vadd.f32 %v1853_v4, %v874_v8  ;;  %v2965_v3 = vadd.f32 %v887_v19, %v886_v12  ;;  %v3465_v12 = vld [vmem:[#allocation24_spill] sm:$0xff]  ;;  %v3466_v8 = vld [vmem:[#allocation25_spill] sm:$0xff]  ;;  %v3468_v19 = vld [vmem:[#allocation26_spill] sm:$0xff] }
 0x2ed   : > { %v879_v11 = vsel %vm878_vm14, %v1853_v4, %v875_v6  ;;  %1680 = vst [vmem:[%s2255_s27 + $0x30] sm:$0xff] %v2965_v3  ;;  %v3453_v4 = vld [vmem:[#allocation15_spill] sm:$0xff] }
 0x2ee   : > { %v884_v48 = vsel %vm881_vm15, %v883_v21, %v879_v11  ;;  %v3469_v6 = vld [vmem:[#allocation27_spill] sm:$0xff]  ;;  %v3470_v21 = vld [vmem:[#allocation28_spill] sm:$0xff] }
 0x2ef   : > { %v889_v32 = vsub.f32 1.0, %v884_v48  ;;  %v891_v18 = vmul.f32 %v2965_v3, %v884_v48  ;;  %v3471_v11 = vld [vmem:[#allocation40_spill] sm:$0xff]  ;;  %v3472_v48 = vld [vmem:[#allocation29_spill] sm:$0xff] }
 0x2f1   : > { %v890_v1 = vmul.f32 %v889_v32, %v2760_v24  ;;  %v3450_v24 = vld [vmem:[#allocation13_spill] sm:$0xff]  ;;  %v3473_v32 = vld [vmem:[#allocation30_spill] sm:$0xff] }
 0x2f3   : > { %v2971_v60 = vadd.f32 %v891_v18, %v890_v1  ;;  %v3474_v1 = vld [vmem:[#allocation31_spill] sm:$0xff]  ;;  %v3475_v18 = vld [vmem:[#allocation41_spill] sm:$0xff] }
 0x2f5   : > { %1681 = vst [vmem:[%s2255_s27 + $0x38] sm:$0xff] %v2971_v60  ;;  %917 = vmatmul.f32.vlgmr.msra.gmra.mxu0 %v2971_v60  ;;  %937 = vmatmul.f32.vlgmr.msra.gmra.mxu1 %v2971_v60 }
 0x2f6   : > { %957 = vmatmul.f32.vlgmr.msra.gmra.mxu2 %v2971_v60  ;;  %977 = vmatmul.f32.vlgmr.msra.gmra.mxu3 %v2971_v60 }
 0x2f7   : > { %1213 = vmatpush.msra.mxu0 %v2768_v25  ;;  %1233 = vmatpush.msra.mxu1 %v2771_v26 }
 0x2f8   : > { %1253 = vmatpush.msra.mxu2 %v2774_v37  ;;  %1273 = vmatpush.msra.mxu3 %v2777_v27 }
 0x2f9   : > { %1214 = vmatpush.msra.mxu0 %v2780_v28  ;;  %1234 = vmatpush.msra.mxu1 %v2783_v29 }
 0x2fa   : > { %1254 = vmatpush.msra.mxu2 %v2786_v30  ;;  %1274 = vmatpush.msra.mxu3 %v2789_v31 }
 0x2fb   : > { %1215 = vmatpush.msra.mxu0 %v2792_v34  ;;  %1235 = vmatpush.msra.mxu1 %v2795_v38 }
 0x2fc   : > { %1255 = vmatpush.msra.mxu2 %v2798_v42  ;;  %1275 = vmatpush.msra.mxu3 %v2801_v46 }
 0x2fd   : > { %1216 = vmatpush.msra.mxu0 %v2804_v50  ;;  %1236 = vmatpush.msra.mxu1 %v2807_v54 }
 0x2fe   : > { %1256 = vmatpush.msra.mxu2 %v2810_v58  ;;  %1276 = vmatpush.msra.mxu3 %v2813_v59 }
 0x2ff   : > { %1217 = vmatpush.msra.mxu0 %v2816_v53  ;;  %1237 = vmatpush.msra.mxu1 %v2819_v62 }
 0x300   : > { %1257 = vmatpush.msra.mxu2 %v2822_v63  ;;  %1277 = vmatpush.msra.mxu3 %v2825_v47 }
 0x301   : > { %1218 = vmatpush.msra.mxu0 %v2828_v55  ;;  %1238 = vmatpush.msra.mxu1 %v2831_v51 }
 0x302   : > { %1258 = vmatpush.msra.mxu2 %v2834_v33  ;;  %1278 = vmatpush.msra.mxu3 %v2837_v35 }
 0x303   : > { %1219 = vmatpush.msra.mxu0 %v2840_v45  ;;  %1239 = vmatpush.msra.mxu1 %v2843_v0 }
 0x304   : > { %1259 = vmatpush.msra.mxu2 %v2846_v57  ;;  %1279 = vmatpush.msra.mxu3 %v2849_v39 }
 0x305   : > { %1220 = vmatpush.msra.mxu0 %v2852_v41  ;;  %1240 = vmatpush.msra.mxu1 %v2855_v36 }
 0x306   : > { %1260 = vmatpush.msra.mxu2 %v2858_v61  ;;  %1280 = vmatpush.msra.mxu3 %v2861_v56 }
 0x307   : > { %1221 = vmatpush.msra.mxu0 %v2864_v52  ;;  %1241 = vmatpush.msra.mxu1 %v2867_v7 }
 0x308   : > { %1261 = vmatpush.msra.mxu2 %v2870_v44  ;;  %1281 = vmatpush.msra.mxu3 %v2873_v49 }
 0x309   : > { %1222 = vmatpush.msra.mxu0 %v3450_v24  ;;  %1242 = vmatpush.msra.mxu1 %v3451_v40 }
 0x30a   : > { %1262 = vmatpush.msra.mxu2 %v3452_v2  ;;  %1282 = vmatpush.msra.mxu3 %v3453_v4 }
 0x30b   : > { %1223 = vmatpush.msra.mxu0 %v3454_v5  ;;  %1243 = vmatpush.msra.mxu1 %v3455_v16 }
 0x30c   : > { %1263 = vmatpush.msra.mxu2 %v3456_v23  ;;  %1283 = vmatpush.msra.mxu3 %v3457_v9 }
 0x30d   : > { %1224 = vmatpush.msra.mxu0 %v3458_v10  ;;  %1244 = vmatpush.msra.mxu1 %v3459_v43 }
 0x30e   : > { %1264 = vmatpush.msra.mxu2 %v3460_v20  ;;  %1284 = vmatpush.msra.mxu3 %v3461_v15 }
 0x30f   : > { %1225 = vmatpush.msra.mxu0 %v3462_v14  ;;  %1245 = vmatpush.msra.mxu1 %v3463_v17 }
 0x310   : > { %1265 = vmatpush.msra.mxu2 %v3464_v22  ;;  %1285 = vmatpush.msra.mxu3 %v3465_v12  ;;  %v1683_v12 = vld [vmem:[%s2244_s15 + $0x88] sm:$0xff] }
 0x311   : > { %1226 = vmatpush.msra.mxu0 %v3466_v8  ;;  %1246 = vmatpush.msra.mxu1 %v3467_v13  ;;  %v3476_v8 = vld [vmem:[#allocation32_spill] sm:$0xff]  ;;  %v3477_v13 = vld [vmem:[#allocation33_spill] sm:$0xff] }
 0x312   : > { %1266 = vmatpush.msra.mxu2 %v3468_v19  ;;  %1286 = vmatpush.msra.mxu3 %v3469_v6  ;;  %v1682_v19 = vld [vmem:[%s2244_s15 + $0x80] sm:$0xff] }
 0x313   : > { %1227 = vmatpush.msra.mxu0 %v3470_v21  ;;  %1247 = vmatpush.msra.mxu1 %v3471_v11 }
 0x314   : > { %1267 = vmatpush.msra.mxu2 %v3472_v48  ;;  %1287 = vmatpush.msra.mxu3 %v3473_v32  ;;  %v1684_v48 = vld [vmem:[%s2244_s15 + $0x90] sm:$0xff] }
 0x315   : > { %1228 = vmatpush.msra.mxu0 %v3474_v1  ;;  %1248 = vmatpush.msra.mxu1 %v3475_v18 }
 0x316   : > { %1268 = vmatpush.msra.mxu2 %v3476_v8  ;;  %1288 = vmatpush.msra.mxu3 %v3477_v13 }
 0x372   : > { %v918_v6 = vpop.f32.mrf.mxu0  ;;  %v938_v22 = vpop.f32.mrf.mxu1 }
 0x373   : > { %v981_v21 = vadd.f32 %v1682_v19, %v918_v6  ;;  %v982_v17 = vadd.f32 %v1683_v12, %v938_v22 }
 0x375   : > { %v1686_v11 = vmul.f32 -1.442695, %v981_v21  ;;  %v1687_v14 = vmul.f32 -1.442695, %v982_v17 }
 0x377   : > { %1854 = vpow2.f32 %v1686_v11 }
 0x378   : > { %1856 = vpow2.f32 %v1687_v14 }
 0x379   : > { %v958_v32 = vpop.f32.mrf.mxu2 }
 0x37a   : > { %v983_v15 = vadd.f32 %v1684_v48, %v958_v32  ;;  %v978_v32 = vpop.f32.mrf.mxu3 }
 0x37c   : > { %v1688_v1 = vmul.f32 -1.442695, %v983_v15 }
 0x37d   : > { %v1855_v20 = vpop.eup %1854 }
 0x37e   : > { %v1857_v18 = vpop.eup %1856  ;;  %v988_v43 = vadd.f32 1.0, %v1855_v20  ;;  %1858 = vpow2.f32 %v1688_v1  ;;  %v1685_v20 = vld [vmem:[%s2244_s15 + $0x98] sm:$0xff] }
 0x37f   : > { %v1007_v8 = vadd.f32 1.0, %v1857_v18 }
 0x380   : > { %1860 = vrcp.f32 %v988_v43  ;;  %v1000_v14 = vand.u32 2147483648, %v988_v43  ;;  %v998_v15 = vand.u32 2147483647, %v988_v43  ;;  %vm994_vm2 = vweird.f32 %v988_v43 }
 0x381   : > { %1862 = vrcp.f32 %v1007_v8  ;;  %v1019_v48 = vand.u32 2147483648, %v1007_v8  ;;  %v1017_v18 = vand.u32 2147483647, %v1007_v8  ;;  %vm1013_vm4 = vweird.f32 %v1007_v8 }
 0x382   : > { %v1001_v16 = vor.u32 1.1754944e-38, %v1000_v14  ;;  %vm999_vm5 = vcmp.eq.f32.partialorder %v998_v15, 8.507059e+37 }
 0x383   : > { %vm1018_vm7 = vcmp.eq.f32.partialorder %v1017_v18, 8.507059e+37 }
 0x384   : > { %v1859_v13 = vpop.eup %1858 }
 0x385   : > { %v1026_v10 = vadd.f32 1.0, %v1859_v13 }
 0x386   : > { %v1861_v19 = vpop.eup %1860 }
 0x387   : > { %v1863_v22 = vpop.eup %1862  ;;  %v990_v12 = vmul.f32 %v1861_v19, %v988_v43  ;;  %1864 = vrcp.f32 %v1026_v10  ;;  %vm995_vm0 = vweird.f32 %v1861_v19  ;;  %v1038_v24 = vand.u32 2147483648, %v1026_v10 }
 0x388   : > { %v1009_v17 = vmul.f32 %v1863_v22, %v1007_v8  ;;  %vm1014_vm1 = vweird.f32 %v1863_v22  ;;  %vm996_vm3 = vmor %vm994_vm2, %vm995_vm0  ;;  %v1036_v14 = vand.u32 2147483647, %v1026_v10  ;;  %vm1032_vm9 = vweird.f32 %v1026_v10 }
 0x389   : > { %v991_v6 = vsub.f32 1.0, %v990_v12  ;;  %v984_v12 = vadd.f32 %v1685_v20, %v978_v32  ;;  %vm1015_vm6 = vmor %vm1013_vm4, %vm1014_vm1 }
 0x38a   : > { %v1010_v21 = vsub.f32 1.0, %v1009_v17  ;;  %v1020_v17 = vor.u32 1.1754944e-38, %v1019_v48  ;;  %vm1037_vm11 = vcmp.eq.f32.partialorder %v1036_v14, 8.507059e+37 }
 0x38b   : > { %v992_v11 = vmul.f32 %v1861_v19, %v991_v6 }
 0x38c   : > { %v1011_v1 = vmul.f32 %v1863_v22, %v1010_v21 }
 0x38d   : > { %v1865_v9 = vpop.eup %1864  ;;  %v993_v23 = vadd.f32 %v1861_v19, %v992_v11 }
 0x38e   : > { %v1028_v13 = vmul.f32 %v1865_v9, %v1026_v10  ;;  %v1012_v5 = vadd.f32 %v1863_v22, %v1011_v1  ;;  %vm1033_vm8 = vweird.f32 %v1865_v9 }
 0x38f   : > { %v997_v4 = vsel %vm996_vm3, %v1861_v19, %v993_v23  ;;  %vm1034_vm10 = vmor %vm1032_vm9, %vm1033_vm8  ;;  %v1039_v19 = vor.u32 1.1754944e-38, %v1038_v24 }
 0x390   : > { %v1029_v6 = vsub.f32 1.0, %v1028_v13  ;;  %v1002_v2 = vsel %vm999_vm5, %v1001_v16, %v997_v4  ;;  %v1016_v40 = vsel %vm1015_vm6, %v1863_v22, %v1012_v5 }
 0x391   : > { %v1021_v21 = vsel %vm1018_vm7, %v1020_v17, %v1016_v40  ;;  %v1042_v11 = vmul.f32 %v1002_v2, %v2965_v3 }
 0x392   : > { %v1030_v43 = vmul.f32 %v1865_v9, %v1029_v6  ;;  %v1043_v1 = vmul.f32 %v1021_v21, %v984_v12 }
 0x394   : > { %v1031_v8 = vadd.f32 %v1865_v9, %v1030_v43  ;;  %v3048_v23 = vadd.f32 %v1043_v1, %v1042_v11 }
 0x396   : > { %v1035_v15 = vsel %vm1034_vm10, %v1865_v9, %v1031_v8  ;;  %1689 = vst [vmem:[%s2255_s27 + $0x40] sm:$0xff] %v3048_v23 }
 0x397   : > { %v1040_v4 = vsel %vm1037_vm11, %v1039_v19, %v1035_v15  ;;  %v1694_v19 = vld [vmem:[%s2244_s15 + $0xb8] sm:$0xff] }
 0x398   : > { %v1045_v40 = vsub.f32 1.0, %v1040_v4  ;;  %v1047_v3 = vmul.f32 %v3048_v23, %v1040_v4 }
 0x39a   : > { %v1046_v5 = vmul.f32 %v1045_v40, %v2971_v60  ;;  %v1693_v60 = vld [vmem:[%s2244_s15 + $0xb0] sm:$0xff] }
 0x39c   : > { %v3054_v2 = vadd.f32 %v1047_v3, %v1046_v5 }
 0x39e   : > { %1690 = vst [vmem:[%s2255_s27 + $0x48] sm:$0xff] %v3054_v2  ;;  %1073 = vmatmul.f32.vlgmr.msrb.gmra.mxu0 %v3054_v2  ;;  %1093 = vmatmul.f32.vlgmr.msrb.gmra.mxu1 %v3054_v2 }
 0x39f   : > { %1113 = vmatmul.f32.vlgmr.msrb.gmra.mxu2 %v3054_v2  ;;  %1133 = vmatmul.f32.vlgmr.msrb.gmra.mxu3 %v3054_v2 }
 0x3a0   : > { %1369 = vmatpush.msrb.mxu0 %v2768_v25  ;;  %1389 = vmatpush.msrb.mxu1 %v2771_v26  ;;  %v3478_v25 = vld [vmem:[#allocation13_spill] sm:$0xff]  ;;  %v3479_v26 = vld [vmem:[#allocation35_spill] sm:$0xff] }
 0x3a1   : > { %1409 = vmatpush.msrb.mxu2 %v2774_v37  ;;  %1429 = vmatpush.msrb.mxu3 %v2777_v27  ;;  %v3480_v37 = vld [vmem:[#allocation14_spill] sm:$0xff]  ;;  %v3481_v27 = vld [vmem:[#allocation15_spill] sm:$0xff] }
 0x3a2   : > { %1370 = vmatpush.msrb.mxu0 %v2780_v28  ;;  %1390 = vmatpush.msrb.mxu1 %v2783_v29  ;;  %v3482_v28 = vld [vmem:[#allocation16_spill] sm:$0xff] }
 0x3a3   : > { %1410 = vmatpush.msrb.mxu2 %v2786_v30  ;;  %1430 = vmatpush.msrb.mxu3 %v2789_v31  ;;  %v3483_v29 = vld [vmem:[#allocation36_spill] sm:$0xff]  ;;  %v3484_v30 = vld [vmem:[#allocation17_spill] sm:$0xff]  ;;  %v3485_v31 = vld [vmem:[#allocation18_spill] sm:$0xff] }
 0x3a4   : > { %1371 = vmatpush.msrb.mxu0 %v2792_v34  ;;  %1391 = vmatpush.msrb.mxu1 %v2795_v38  ;;  %v3486_v34 = vld [vmem:[#allocation19_spill] sm:$0xff]  ;;  %v3487_v38 = vld [vmem:[#allocation37_spill] sm:$0xff] }
 0x3a5   : > { %1411 = vmatpush.msrb.mxu2 %v2798_v42  ;;  %1431 = vmatpush.msrb.mxu3 %v2801_v46  ;;  %v3488_v42 = vld [vmem:[#allocation20_spill] sm:$0xff]  ;;  %v3489_v46 = vld [vmem:[#allocation21_spill] sm:$0xff] }
 0x3a6   : > { %1372 = vmatpush.msrb.mxu0 %v2804_v50  ;;  %1392 = vmatpush.msrb.mxu1 %v2807_v54  ;;  %v3490_v50 = vld [vmem:[#allocation22_spill] sm:$0xff] }
 0x3a7   : > { %1412 = vmatpush.msrb.mxu2 %v2810_v58  ;;  %1432 = vmatpush.msrb.mxu3 %v2813_v59  ;;  %v3491_v54 = vld [vmem:[#allocation38_spill] sm:$0xff]  ;;  %v3492_v58 = vld [vmem:[#allocation23_spill] sm:$0xff]  ;;  %v3493_v59 = vld [vmem:[#allocation24_spill] sm:$0xff] }
 0x3a8   : > { %1373 = vmatpush.msrb.mxu0 %v2816_v53  ;;  %1393 = vmatpush.msrb.mxu1 %v2819_v62  ;;  %v3494_v53 = vld [vmem:[#allocation25_spill] sm:$0xff]  ;;  %v3495_v62 = vld [vmem:[#allocation39_spill] sm:$0xff] }
 0x3a9   : > { %1413 = vmatpush.msrb.mxu2 %v2822_v63  ;;  %1433 = vmatpush.msrb.mxu3 %v2825_v47  ;;  %v3496_v63 = vld [vmem:[#allocation26_spill] sm:$0xff]  ;;  %v3497_v47 = vld [vmem:[#allocation27_spill] sm:$0xff] }
 0x3aa   : > { %1374 = vmatpush.msrb.mxu0 %v2828_v55  ;;  %1394 = vmatpush.msrb.mxu1 %v2831_v51  ;;  %v3498_v55 = vld [vmem:[#allocation28_spill] sm:$0xff] }
 0x3ab   : > { %1414 = vmatpush.msrb.mxu2 %v2834_v33  ;;  %1434 = vmatpush.msrb.mxu3 %v2837_v35  ;;  %v3499_v51 = vld [vmem:[#allocation40_spill] sm:$0xff]  ;;  %v3500_v33 = vld [vmem:[#allocation29_spill] sm:$0xff]  ;;  %v3501_v35 = vld [vmem:[#allocation30_spill] sm:$0xff] }
 0x3ac   : > { %1375 = vmatpush.msrb.mxu0 %v2840_v45  ;;  %1395 = vmatpush.msrb.mxu1 %v2843_v0  ;;  %v3502_v45 = vld [vmem:[#allocation31_spill] sm:$0xff]  ;;  %v3503_v0 = vld [vmem:[#allocation41_spill] sm:$0xff] }
 0x3ad   : > { %1415 = vmatpush.msrb.mxu2 %v2846_v57  ;;  %1435 = vmatpush.msrb.mxu3 %v2849_v39  ;;  %v3504_v57 = vld [vmem:[#allocation32_spill] sm:$0xff]  ;;  %v3505_v39 = vld [vmem:[#allocation33_spill] sm:$0xff] }
 0x3ae   : > { %1376 = vmatpush.msrb.mxu0 %v2852_v41  ;;  %1396 = vmatpush.msrb.mxu1 %v2855_v36  ;;  %v1691_v41 = vld [vmem:[%s2244_s15 + $0xa0] sm:$0xff]  ;;  %v1692_v36 = vld [vmem:[%s2244_s15 + $0xa8] sm:$0xff] }
 0x3af   : > { %1416 = vmatpush.msrb.mxu2 %v2858_v61  ;;  %1436 = vmatpush.msrb.mxu3 %v2861_v56 }
 0x3b0   : > { %1377 = vmatpush.msrb.mxu0 %v2864_v52  ;;  %1397 = vmatpush.msrb.mxu1 %v2867_v7 }
 0x3b1   : > { %1417 = vmatpush.msrb.mxu2 %v2870_v44  ;;  %1437 = vmatpush.msrb.mxu3 %v2873_v49 }
 0x3b2   : > { %1378 = vmatpush.msrb.mxu0 %v3478_v25  ;;  %1398 = vmatpush.msrb.mxu1 %v3479_v26 }
 0x3b3   : > { %1418 = vmatpush.msrb.mxu2 %v3480_v37  ;;  %1438 = vmatpush.msrb.mxu3 %v3481_v27 }
 0x3b4   : > { %1379 = vmatpush.msrb.mxu0 %v3482_v28  ;;  %1399 = vmatpush.msrb.mxu1 %v3483_v29 }
 0x3b5   : > { %1419 = vmatpush.msrb.mxu2 %v3484_v30  ;;  %1439 = vmatpush.msrb.mxu3 %v3485_v31 }
 0x3b6   : > { %1380 = vmatpush.msrb.mxu0 %v3486_v34  ;;  %1400 = vmatpush.msrb.mxu1 %v3487_v38 }
 0x3b7   : > { %1420 = vmatpush.msrb.mxu2 %v3488_v42  ;;  %1440 = vmatpush.msrb.mxu3 %v3489_v46 }
 0x3b8   : > { %1381 = vmatpush.msrb.mxu0 %v3490_v50  ;;  %1401 = vmatpush.msrb.mxu1 %v3491_v54 }
 0x3b9   : > { %1421 = vmatpush.msrb.mxu2 %v3492_v58  ;;  %1441 = vmatpush.msrb.mxu3 %v3493_v59 }
 0x3ba   : > { %1382 = vmatpush.msrb.mxu0 %v3494_v53  ;;  %1402 = vmatpush.msrb.mxu1 %v3495_v62 }
 0x3bb   : > { %1422 = vmatpush.msrb.mxu2 %v3496_v63  ;;  %1442 = vmatpush.msrb.mxu3 %v3497_v47 }
 0x3bc   : > { %1383 = vmatpush.msrb.mxu0 %v3498_v55  ;;  %1403 = vmatpush.msrb.mxu1 %v3499_v51 }
 0x3bd   : > { %1423 = vmatpush.msrb.mxu2 %v3500_v33  ;;  %1443 = vmatpush.msrb.mxu3 %v3501_v35  ;;  %v1700_v35 = vld [vmem:[%s2244_s15 + $0xc0] sm:$0xff] }
 0x3be   : > { %1384 = vmatpush.msrb.mxu0 %v3502_v45  ;;  %1404 = vmatpush.msrb.mxu1 %v3503_v0  ;;  %v1701_v45 = vld [vmem:[%s2244_s15 + $0xc8] sm:$0xff] }
 0x3bf   : > { %1424 = vmatpush.msrb.mxu2 %v3504_v57  ;;  %1444 = vmatpush.msrb.mxu3 %v3505_v39 }
 0x41b   : > { %v1074_v61 = vpop.f32.mrf.mxu0  ;;  %v1094_v56 = vpop.f32.mrf.mxu1 }
 0x41c   : > { %v1137_v52 = vadd.f32 %v1691_v41, %v1074_v61  ;;  %v1138_v7 = vadd.f32 %v1692_v36, %v1094_v56  ;;  %v1702_v61 = vld [vmem:[%s2244_s15 + $0xd0] sm:$0xff] }
 0x41e   : > { %v1695_v44 = vmul.f32 -1.442695, %v1137_v52  ;;  %v1696_v49 = vmul.f32 -1.442695, %v1138_v7 }
 0x420   : > { %1866 = vpow2.f32 %v1695_v44 }
 0x421   : > { %1868 = vpow2.f32 %v1696_v49 }
 0x422   : > { %v1114_v24 = vpop.f32.mrf.mxu2  ;;  %v1134_v15 = vpop.f32.mrf.mxu3 }
 0x423   : > { %v1139_v16 = vadd.f32 %v1693_v60, %v1114_v24  ;;  %v1140_v27 = vadd.f32 %v1694_v19, %v1134_v15 }
 0x425   : > { %v1697_v9 = vmul.f32 -1.442695, %v1139_v16 }
 0x426   : > { %v1867_v10 = vpop.eup %1866 }
 0x427   : > { %v1869_v22 = vpop.eup %1868  ;;  %v1144_v48 = vadd.f32 1.0, %v1867_v10  ;;  %1870 = vpow2.f32 %v1697_v9 }
 0x428   : > { %v1163_v20 = vadd.f32 1.0, %v1869_v22 }
 0x429   : > { %1872 = vrcp.f32 %v1144_v48  ;;  %v1156_v11 = vand.u32 2147483648, %v1144_v48  ;;  %v1154_v1 = vand.u32 2147483647, %v1144_v48  ;;  %vm1150_vm14 = vweird.f32 %v1144_v48 }
 0x42a   : > { %1874 = vrcp.f32 %v1163_v20  ;;  %v1175_v8 = vand.u32 2147483648, %v1163_v20  ;;  %v1173_v40 = vand.u32 2147483647, %v1163_v20  ;;  %vm1169_vm0 = vweird.f32 %v1163_v20 }
 0x42b   : > { %v1157_v26 = vor.u32 1.1754944e-38, %v1156_v11  ;;  %vm1155_vm1 = vcmp.eq.f32.partialorder %v1154_v1, 8.507059e+37 }
 0x42c   : > { %v1176_v29 = vor.u32 1.1754944e-38, %v1175_v8  ;;  %vm1174_vm3 = vcmp.eq.f32.partialorder %v1173_v40, 8.507059e+37 }
 0x42d   : > { %v1871_v32 = vpop.eup %1870 }
 0x42e   : > { %v1182_v18 = vadd.f32 1.0, %v1871_v32 }
 0x42f   : > { %v1873_v13 = vpop.eup %1872 }
 0x430   : > { %v1875_v12 = vpop.eup %1874  ;;  %v1146_v17 = vmul.f32 %v1873_v13, %v1144_v48  ;;  %1876 = vrcp.f32 %v1182_v18  ;;  %vm1151_vm12 = vweird.f32 %v1873_v13  ;;  %v1194_v42 = vand.u32 2147483648, %v1182_v18 }
 0x431   : > { %v1165_v6 = vmul.f32 %v1875_v12, %v1163_v20  ;;  %vm1170_vm13 = vweird.f32 %v1875_v12  ;;  %vm1152_vm15 = vmor %vm1150_vm14, %vm1151_vm12  ;;  %v1192_v54 = vand.u32 2147483647, %v1182_v18  ;;  %vm1188_vm5 = vweird.f32 %v1182_v18 }
 0x432   : > { %v1147_v21 = vsub.f32 1.0, %v1146_v17  ;;  %vm1171_vm2 = vmor %vm1169_vm0, %vm1170_vm13  ;;  %v1195_v62 = vor.u32 1.1754944e-38, %v1194_v42 }
 0x433   : > { %v1166_v43 = vsub.f32 1.0, %v1165_v6  ;;  %vm1193_vm7 = vcmp.eq.f32.partialorder %v1192_v54, 8.507059e+37 }
 0x434   : > { %v1148_v14 = vmul.f32 %v1873_v13, %v1147_v21  ;;  %v1703_v21 = vld [vmem:[%s2244_s15 + $0xd8] sm:$0xff] }
 0x435   : > { %v1167_v4 = vmul.f32 %v1875_v12, %v1166_v43 }
 0x436   : > { %v1877_v5 = vpop.eup %1876  ;;  %v1149_v3 = vadd.f32 %v1873_v13, %v1148_v14 }
 0x437   : > { %v1184_v25 = vmul.f32 %v1877_v5, %v1182_v18  ;;  %v1168_v37 = vadd.f32 %v1875_v12, %v1167_v4  ;;  %vm1189_vm4 = vweird.f32 %v1877_v5 }
 0x438   : > { %v1153_v28 = vsel %vm1152_vm15, %v1873_v13, %v1149_v3  ;;  %vm1190_vm6 = vmor %vm1188_vm5, %vm1189_vm4 }
 0x439   : > { %v1185_v30 = vsub.f32 1.0, %v1184_v25  ;;  %v1158_v31 = vsel %vm1155_vm1, %v1157_v26, %v1153_v28  ;;  %v1172_v34 = vsel %vm1171_vm2, %v1875_v12, %v1168_v37 }
 0x43a   : > { %v1177_v38 = vsel %vm1174_vm3, %v1176_v29, %v1172_v34  ;;  %v1198_v46 = vmul.f32 %v1158_v31, %v3048_v23 }
 0x43b   : > { %v1186_v50 = vmul.f32 %v1877_v5, %v1185_v30  ;;  %v1199_v58 = vmul.f32 %v1177_v38, %v1140_v27 }
 0x43d   : > { %v1187_v59 = vadd.f32 %v1877_v5, %v1186_v50  ;;  %v3131_v53 = vadd.f32 %v1199_v58, %v1198_v46 }
 0x43f   : > { %v1191_v63 = vsel %vm1190_vm6, %v1877_v5, %v1187_v59  ;;  %1698 = vst [vmem:[%s2255_s27 + $0x50] sm:$0xff] %v3131_v53 }
 0x440   : > { %v1196_v47 = vsel %vm1193_vm7, %v1195_v62, %v1191_v63  ;;  %v1709_v63 = vld [vmem:[%s2244_s15 + $0xe0] sm:$0xff] }
 0x441   : > { %v1201_v55 = vsub.f32 1.0, %v1196_v47  ;;  %v1203_v51 = vmul.f32 %v3131_v53, %v1196_v47  ;;  %v1710_v47 = vld [vmem:[%s2244_s15 + $0xe8] sm:$0xff] }
 0x443   : > { %v1202_v23 = vmul.f32 %v1201_v55, %v3054_v2 }
 0x445   : > { %v3137_v33 = vadd.f32 %v1203_v51, %v1202_v23 }
 0x447   : > { %1699 = vst [vmem:[%s2255_s27 + $0x58] sm:$0xff] %v3137_v33  ;;  %1229 = vmatmul.f32.vlgmr.msra.gmra.mxu0 %v3137_v33  ;;  %1249 = vmatmul.f32.vlgmr.msra.gmra.mxu1 %v3137_v33 }
 0x448   : > { %1269 = vmatmul.f32.vlgmr.msra.gmra.mxu2 %v3137_v33  ;;  %1289 = vmatmul.f32.vlgmr.msra.gmra.mxu3 %v3137_v33 }
 0x4c4   : > { %v1230_v0 = vpop.f32.mrf.mxu0  ;;  %v1250_v57 = vpop.f32.mrf.mxu1 }
 0x4c5   : > { %v1293_v2 = vadd.f32 %v1700_v35, %v1230_v0  ;;  %v1294_v39 = vadd.f32 %v1701_v45, %v1250_v57  ;;  %v1711_v0 = vld [vmem:[%s2244_s15 + $0xf0] sm:$0xff] }
 0x4c7   : > { %v1704_v41 = vmul.f32 -1.442695, %v1293_v2  ;;  %v1705_v36 = vmul.f32 -1.442695, %v1294_v39 }
 0x4c9   : > { %1878 = vpow2.f32 %v1704_v41 }
 0x4ca   : > { %1880 = vpow2.f32 %v1705_v36 }
 0x4cb   : > { %v1270_v56 = vpop.f32.mrf.mxu2  ;;  %v1290_v11 = vpop.f32.mrf.mxu3 }
 0x4cc   : > { %v1295_v52 = vadd.f32 %v1702_v61, %v1270_v56  ;;  %v1296_v40 = vadd.f32 %v1703_v21, %v1290_v11 }
 0x4ce   : > { %v1706_v7 = vmul.f32 -1.442695, %v1295_v52 }
 0x4cf   : > { %v1879_v44 = vpop.eup %1878 }
 0x4d0   : > { %v1881_v49 = vpop.eup %1880  ;;  %v1300_v60 = vadd.f32 1.0, %v1879_v44  ;;  %1882 = vpow2.f32 %v1706_v7 }
 0x4d1   : > { %v1319_v24 = vadd.f32 1.0, %v1881_v49 }
 0x4d2   : > { %1884 = vrcp.f32 %v1300_v60  ;;  %v1312_v18 = vand.u32 2147483648, %v1300_v60  ;;  %v1310_v17 = vand.u32 2147483647, %v1300_v60  ;;  %vm1306_vm10 = vweird.f32 %v1300_v60 }
 0x4d3   : > { %1886 = vrcp.f32 %v1319_v24  ;;  %v1331_v6 = vand.u32 2147483648, %v1319_v24  ;;  %v1329_v14 = vand.u32 2147483647, %v1319_v24  ;;  %vm1325_vm12 = vweird.f32 %v1319_v24 }
 0x4d4   : > { %v1313_v15 = vor.u32 1.1754944e-38, %v1312_v18  ;;  %vm1311_vm13 = vcmp.eq.f32.partialorder %v1310_v17, 8.507059e+37 }
 0x4d5   : > { %v1332_v3 = vor.u32 1.1754944e-38, %v1331_v6  ;;  %vm1330_vm15 = vcmp.eq.f32.partialorder %v1329_v14, 8.507059e+37 }
 0x4d6   : > { %v1883_v16 = vpop.eup %1882 }
 0x4d7   : > { %v1338_v9 = vadd.f32 1.0, %v1883_v16 }
 0x4d8   : > { %v1885_v10 = vpop.eup %1884 }
 0x4d9   : > { %v1887_v22 = vpop.eup %1886  ;;  %v1302_v48 = vmul.f32 %v1885_v10, %v1300_v60  ;;  %1888 = vrcp.f32 %v1338_v9  ;;  %vm1307_vm8 = vweird.f32 %v1885_v10  ;;  %v1350_v28 = vand.u32 2147483648, %v1338_v9 }
 0x4da   : > { %v1321_v20 = vmul.f32 %v1887_v22, %v1319_v24  ;;  %vm1326_vm9 = vweird.f32 %v1887_v22  ;;  %vm1308_vm11 = vmor %vm1306_vm10, %vm1307_vm8  ;;  %v1348_v31 = vand.u32 2147483647, %v1338_v9  ;;  %vm1344_vm1 = vweird.f32 %v1338_v9 }
 0x4db   : > { %v1303_v32 = vsub.f32 1.0, %v1302_v48  ;;  %vm1327_vm14 = vmor %vm1325_vm12, %vm1326_vm9  ;;  %v1351_v46 = vor.u32 1.1754944e-38, %v1350_v28 }
 0x4dc   : > { %v1322_v13 = vsub.f32 1.0, %v1321_v20  ;;  %vm1349_vm3 = vcmp.eq.f32.partialorder %v1348_v31, 8.507059e+37 }
 0x4dd   : > { %v1304_v12 = vmul.f32 %v1885_v10, %v1303_v32  ;;  %v1712_v32 = vld [vmem:[%s2244_s15 + $0xf8] sm:$0xff] }
 0x4de   : > { %v1323_v43 = vmul.f32 %v1887_v22, %v1322_v13 }
 0x4df   : > { %v1889_v1 = vpop.eup %1888  ;;  %v1305_v8 = vadd.f32 %v1885_v10, %v1304_v12 }
 0x4e0   : > { %v1340_v19 = vmul.f32 %v1889_v1, %v1338_v9  ;;  %v1324_v4 = vadd.f32 %v1887_v22, %v1323_v43  ;;  %vm1345_vm0 = vweird.f32 %v1889_v1 }
 0x4e1   : > { %v1309_v5 = vsel %vm1308_vm11, %v1885_v10, %v1305_v8  ;;  %vm1346_vm2 = vmor %vm1344_vm1, %vm1345_vm0 }
 0x4e2   : > { %v1341_v25 = vsub.f32 1.0, %v1340_v19  ;;  %v1314_v26 = vsel %vm1311_vm13, %v1313_v15, %v1309_v5  ;;  %v1328_v37 = vsel %vm1327_vm14, %v1887_v22, %v1324_v4 }
 0x4e3   : > { %v1333_v27 = vsel %vm1330_vm15, %v1332_v3, %v1328_v37  ;;  %v1354_v29 = vmul.f32 %v1314_v26, %v3131_v53 }
 0x4e4   : > { %v1342_v30 = vmul.f32 %v1889_v1, %v1341_v25  ;;  %v1355_v34 = vmul.f32 %v1333_v27, %v1296_v40 }
 0x4e6   : > { %v1343_v38 = vadd.f32 %v1889_v1, %v1342_v30  ;;  %v3150_v42 = vadd.f32 %v1355_v34, %v1354_v29 }
 0x4e8   : > { %v1347_v50 = vsel %vm1346_vm2, %v1889_v1, %v1343_v38  ;;  %1707 = vst [vmem:[%s2255_s27 + $0x60] sm:$0xff] %v3150_v42 }
 0x4e9   : > { %v1352_v54 = vsel %vm1349_vm3, %v1351_v46, %v1347_v50 }
 0x4ea   : > { %v1357_v58 = vsub.f32 1.0, %v1352_v54  ;;  %v1359_v53 = vmul.f32 %v3150_v42, %v1352_v54 }
 0x4ec   : > { %v1358_v59 = vmul.f32 %v1357_v58, %v3137_v33 }
 0x4ee   : > { %v3156_v62 = vadd.f32 %v1359_v53, %v1358_v59 }
 0x4f0   : > { %1708 = vst [vmem:[%s2255_s27 + $0x68] sm:$0xff] %v3156_v62  ;;  %1385 = vmatmul.f32.vlgmr.msrb.gmra.mxu0 %v3156_v62  ;;  %1405 = vmatmul.f32.vlgmr.msrb.gmra.mxu1 %v3156_v62 }
 0x4f1   : > { %1425 = vmatmul.f32.vlgmr.msrb.gmra.mxu2 %v3156_v62  ;;  %1445 = vmatmul.f32.vlgmr.msrb.gmra.mxu3 %v3156_v62 }
 0x56d   : > { %v1386_v55 = vpop.f32.mrf.mxu0  ;;  %v1406_v23 = vpop.f32.mrf.mxu1 }
 0x56e   : > { %v1449_v51 = vadd.f32 %v1709_v63, %v1386_v55  ;;  %v1450_v33 = vadd.f32 %v1710_v47, %v1406_v23 }
 0x570   : > { %v1713_v35 = vmul.f32 -1.442695, %v1449_v51  ;;  %v1714_v45 = vmul.f32 -1.442695, %v1450_v33 }
 0x572   : > { %1890 = vpow2.f32 %v1713_v35 }
 0x573   : > { %1892 = vpow2.f32 %v1714_v45 }
 0x574   : > { %v1426_v57 = vpop.f32.mrf.mxu2  ;;  %v1446_v18 = vpop.f32.mrf.mxu3 }
 0x575   : > { %v1451_v2 = vadd.f32 %v1711_v0, %v1426_v57  ;;  %v1452_v14 = vadd.f32 %v1712_v32, %v1446_v18 }
 0x577   : > { %v1715_v39 = vmul.f32 -1.442695, %v1451_v2 }
 0x578   : > { %v1891_v41 = vpop.eup %1890 }
 0x579   : > { %v1893_v36 = vpop.eup %1892  ;;  %v1456_v61 = vadd.f32 1.0, %v1891_v41  ;;  %1894 = vpow2.f32 %v1715_v39 }
 0x57a   : > { %v1475_v56 = vadd.f32 1.0, %v1893_v36 }
 0x57b   : > { %1896 = vrcp.f32 %v1456_v61  ;;  %v1468_v9 = vand.u32 2147483648, %v1456_v61  ;;  %v1466_v48 = vand.u32 2147483647, %v1456_v61  ;;  %vm1462_vm6 = vweird.f32 %v1456_v61 }
 0x57c   : > { %1898 = vrcp.f32 %v1475_v56  ;;  %v1487_v20 = vand.u32 2147483648, %v1475_v56  ;;  %v1485_v12 = vand.u32 2147483647, %v1475_v56  ;;  %vm1481_vm8 = vweird.f32 %v1475_v56 }
 0x57d   : > { %v1469_v11 = vor.u32 1.1754944e-38, %v1468_v9  ;;  %vm1467_vm9 = vcmp.eq.f32.partialorder %v1466_v48, 8.507059e+37 }
 0x57e   : > { %v1488_v8 = vor.u32 1.1754944e-38, %v1487_v20  ;;  %vm1486_vm11 = vcmp.eq.f32.partialorder %v1485_v12, 8.507059e+37 }
 0x57f   : > { %v1895_v52 = vpop.eup %1894 }
 0x580   : > { %v1494_v7 = vadd.f32 1.0, %v1895_v52 }
 0x581   : > { %v1897_v44 = vpop.eup %1896 }
 0x582   : > { %v1899_v49 = vpop.eup %1898  ;;  %v1458_v60 = vmul.f32 %v1897_v44, %v1456_v61  ;;  %1900 = vrcp.f32 %v1494_v7  ;;  %vm1463_vm4 = vweird.f32 %v1897_v44  ;;  %v1506_v5 = vand.u32 2147483648, %v1494_v7 }
 0x583   : > { %v1477_v24 = vmul.f32 %v1899_v49, %v1475_v56  ;;  %vm1482_vm5 = vweird.f32 %v1899_v49  ;;  %vm1464_vm7 = vmor %vm1462_vm6, %vm1463_vm4  ;;  %v1504_v26 = vand.u32 2147483647, %v1494_v7  ;;  %vm1500_vm13 = vweird.f32 %v1494_v7 }
 0x584   : > { %v1459_v16 = vsub.f32 1.0, %v1458_v60  ;;  %vm1483_vm10 = vmor %vm1481_vm8, %vm1482_vm5  ;;  %v1507_v29 = vor.u32 1.1754944e-38, %v1506_v5 }
 0x585   : > { %v1478_v10 = vsub.f32 1.0, %v1477_v24  ;;  %vm1505_vm15 = vcmp.eq.f32.partialorder %v1504_v26, 8.507059e+37 }
 0x586   : > { %v1460_v22 = vmul.f32 %v1897_v44, %v1459_v16 }
 0x587   : > { %v1479_v13 = vmul.f32 %v1899_v49, %v1478_v10 }
 0x588   : > { %v1901_v17 = vpop.eup %1900  ;;  %v1461_v6 = vadd.f32 %v1897_v44, %v1460_v22 }
 0x589   : > { %v1496_v21 = vmul.f32 %v1901_v17, %v1494_v7  ;;  %v1480_v43 = vadd.f32 %v1899_v49, %v1479_v13  ;;  %vm1501_vm12 = vweird.f32 %v1901_v17 }
 0x58a   : > { %v1465_v1 = vsel %vm1464_vm7, %v1897_v44, %v1461_v6  ;;  %vm1502_vm14 = vmor %vm1500_vm13, %vm1501_vm12 }
 0x58b   : > { %v1497_v19 = vsub.f32 1.0, %v1496_v21  ;;  %v1470_v15 = vsel %vm1467_vm9, %v1469_v11, %v1465_v1  ;;  %v1484_v4 = vsel %vm1483_vm10, %v1899_v49, %v1480_v43 }
 0x58c   : > { %v1489_v40 = vsel %vm1486_vm11, %v1488_v8, %v1484_v4  ;;  %v1510_v3 = vmul.f32 %v1470_v15, %v3150_v42 }
 0x58d   : > { %v1498_v25 = vmul.f32 %v1901_v17, %v1497_v19  ;;  %v1511_v37 = vmul.f32 %v1489_v40, %v1452_v14 }
 0x58f   : > { %v1499_v27 = vadd.f32 %v1901_v17, %v1498_v25  ;;  %v1512_v28 = vadd.f32 %v1511_v37, %v1510_v3 }
 0x591   : > { %v1503_v30 = vsel %vm1502_vm14, %v1901_v17, %v1499_v27  ;;  %1716 = vst [vmem:[%s2255_s27 + $0x70] sm:$0xff] %v1512_v28 }
 0x592   : > { %v1508_v31 = vsel %vm1505_vm15, %v1507_v29, %v1503_v30  ;;  %1521 = vst [vmem:[#allocation3] sm:$0xff] %v1512_v28 }
 0x593   : > { %v1513_v34 = vsub.f32 1.0, %v1508_v31  ;;  %v1515_v42 = vmul.f32 %v1512_v28, %v1508_v31 }
 0x595   : > { %v1514_v38 = vmul.f32 %v1513_v34, %v3156_v62 }
 0x597   : > { %v1516_v46 = vadd.f32 %v1515_v42, %v1514_v38 }
 0x599   : > { %1717 = vst [vmem:[%s2255_s27 + $0x78] sm:$0xff] %v1516_v46 }
 0x59a   : > { %1520 = vst [vmem:[#allocation2] sm:$0xff] %v1516_v46 }
 0x59b   : > { %2053 = shalt.err (!%p2050_p3)
}
 0x59c   : > { %s2118_s30 = smov 256   ;;  %s2119_s7 = smov 16  }
 0x59d   : > { %1734 = dma.vmem_to_hbm [thread:$0]  (%p2217_p5), %s1539_s6, 2048, %s1541_s12, %s1523_s16, %s2118_s30, %s2118_s30, %s2119_s7  }
 0x59e PF: > { %s1555_s15 = sand.u32 1, %s2092_s9   ;;  %p1745_p7 = pnand %p1642_p11, %p2184_p6 }
 0x59f   : > { %s1556_s24 = scalar_lea.sflag [#allocation6], %s1555_s15 }
 0x5a0   : > { %p1746_p9 = pneg %p1745_p7 }
 0x5a2   : > { %2087 = dma.done.wait (%p1746_p9), %s1556_s24, 2048  }
 0x5a3   : > { %2089 = vsyncadd (%p1746_p9), %s1556_s24, 4294965248  ;;  %s19_s14 = sadd.s32 1, %s2112_s14   ;;  %s3506_s9 = smov %s2096_s10 }
 0x5a4   : > { %p16_p2 = scmp.ge.s32.totalorder %s19_s14, 4   ;;  %s3507_s10 = smov %s2100_s11 }
 0x5a5   : > { %s3508_s11 = smov %s2226_s8  ;;  %s3509_s12 = smov %s2108_s13 }
 0x5a6   : > { %s3510_s13 = smov %s3512_s29  ;;  %18 = sbr.rel (!%p16_p2) target bundleno = 7 (0x7), region = 95 }
 0x5ab   :  { %1562 = vsyncpa [#allocation5], 1 }
 0x5ac   :  { %1564 = vsyncpa [#allocation5 + $0x1], 1 }
 0x5ad   :  { %1565 = vsyncpa [#allocation8], 1 }
 0x5ae   :  { %1566 = vsyncpa [#allocation6], 1 }
 0x5af   :  { %1568 = vsyncpa [#allocation6 + $0x1], 1 }

</bundles_post_ra>
